<compile_context>
chip_gen: v6e
topology: v6e:2x2x1
jax: 0.10.0
libtpu: 0.0.40
codegen_flags: <defaults>
</compile_context>

<pallas_src>
import numpy as np
import jax
import jax.numpy as jnp
from jax.experimental import pallas as pl
from jax.experimental.pallas import tpu as pltpu

# ---------------- problem sizes (small, consistent with the module) ----------
N_TOKENS = 16            # batch of ROI features
D_IN = 256               # input_dim (module default is 2048; shrunk for demo)
H1, H2, H3 = 1024, 512, 128   # hidden dims hard-coded in the module's gate
NUM_EXPERTS = 5
E_PAD = 128              # final layer padded to a lane-dense 128-wide output
BALANCE_WEIGHT = 0.1     # unused in forward (kept for parity with the module)


# ---------------- Pallas kernel: gate MLP + masked softmax --------------------
def gate_kernel(x_ref,
                w1_ref, s1_ref, b1_ref,
                w2_ref, s2_ref, b2_ref,
                w3_ref, s3_ref, b3_ref,
                w4_ref, s4_ref, b4_ref,
                probs_ref):
    # TODO(synk): nn.Dropout(0.1) layers are treated as identity (eval mode).
    # int8 weights are dequantized to bf16 in VMEM; per-output-column scales
    # are applied to the f32 accumulator (cheap: N x H elementwise).
    h = jnp.dot(x_ref[...], w1_ref[...].astype(jnp.bfloat16),
                preferred_element_type=jnp.float32)
    h = jnp.maximum(h * s1_ref[...] + b1_ref[...], 0.0).astype(jnp.bfloat16)

    h = jnp.dot(h, w2_ref[...].astype(jnp.bfloat16),
                preferred_element_type=jnp.float32)
    h = jnp.maximum(h * s2_ref[...] + b2_ref[...], 0.0).astype(jnp.bfloat16)

    h = jnp.dot(h, w3_ref[...].astype(jnp.bfloat16),
                preferred_element_type=jnp.float32)
    h = jnp.maximum(h * s3_ref[...] + b3_ref[...], 0.0).astype(jnp.bfloat16)

    logits = jnp.dot(h, w4_ref[...].astype(jnp.bfloat16),
                     preferred_element_type=jnp.float32)
    logits = logits * s4_ref[...] + b4_ref[...]

    # softmax over the first NUM_EXPERTS lanes only (rest are zero padding)
    lane = jax.lax.broadcasted_iota(jnp.int32, logits.shape, 1)
    logits = jnp.where(lane < NUM_EXPERTS, logits, -1e30)
    m = jnp.max(logits, axis=1, keepdims=True)
    e = jnp.exp(logits - m)
    denom = jnp.sum(e, axis=1, keepdims=True)
    probs_ref[...] = e / denom          # exact normalization (routing parity)


def gate_probs(x, params):
    (w1, s1, b1, w2, s2, b2, w3, s3, b3, w4, s4, b4) = params
    n = x.shape[0]
    n_pad = ((n + 7) // 8) * 8          # sublane-align the row block
    xb = x.astype(jnp.bfloat16)
    if n_pad != n:
        xb = jnp.pad(xb, ((0, n_pad - n), (0, 0)))

    def full_spec(shape):
        # whole-array block, single buffer (grid has one step; nothing to pipeline)
        return pl.BlockSpec(shape, lambda i: tuple(0 for _ in shape),
                            pipeline_mode=pl.Buffered(1))

    in_specs = [
        full_spec((n_pad, D_IN)),
        full_spec((D_IN, H1)), full_spec((1, H1)), full_spec((1, H1)),
        full_spec((H1, H2)), full_spec((1, H2)), full_spec((1, H2)),
        full_spec((H2, H3)), full_spec((1, H3)), full_spec((1, H3)),
        full_spec((H3, E_PAD)), full_spec((1, E_PAD)), full_spec((1, E_PAD)),
    ]

    # advisory cost: int8 weight bytes dominate; flags the call as mem-bound
    weight_elems = D_IN * H1 + H1 * H2 + H2 * H3 + H3 * E_PAD
    bytes_accessed = (weight_elems                      # int8 weights
                      + 2 * 4 * (H1 + H2 + H3 + E_PAD)  # f32 scales + biases
                      + n_pad * D_IN * 2                # bf16 activations in
                      + n_pad * E_PAD * 4)              # f32 probs out
    cost = pl.CostEstimate(flops=2 * n_pad * weight_elems,
                           transcendentals=n_pad * E_PAD,
                           bytes_accessed=bytes_accessed)

    probs_padded = pl.pallas_call(
        gate_kernel,
        out_shape=jax.ShapeDtypeStruct((n_pad, E_PAD), jnp.float32),
        grid_spec=pltpu.PrefetchScalarGridSpec(
            num_scalar_prefetch=0,
            grid=(1,),                   # single step: weights streamed once
            in_specs=in_specs,
            out_specs=full_spec((n_pad, E_PAD)),
        ),
        compiler_params=pltpu.CompilerParams(
            dimension_semantics=("arbitrary",),   # no duplicated weight DMA on v7x megacore
            vmem_limit_bytes=16 * 1024 * 1024,    # single-buffered int8 weights: ample headroom
        ),
        cost_estimate=cost,
    )(xb, w1, s1, b1, w2, s2, b2, w3, s3, b3, w4, s4, b4)

    return probs_padded[:n, :NUM_EXPERTS]


# ---------------- parameter init + int8 per-column quantization --------------
def init_linear(key, fan_in, fan_out):
    kw, kb = jax.random.split(key)
    bound = 1.0 / np.sqrt(fan_in)
    w = jax.random.uniform(kw, (fan_in, fan_out), jnp.float32, -bound, bound)
    b = jax.random.uniform(kb, (1, fan_out), jnp.float32, -bound, bound)
    return w, b


def quantize_per_col(w):
    amax = jnp.max(jnp.abs(w), axis=0, keepdims=True)
    scale = jnp.maximum(amax / 127.0, 1e-8)
    q = jnp.clip(jnp.round(w / scale), -127.0, 127.0).astype(jnp.int8)
    return q, scale.astype(jnp.float32)


def init_params(key):
    k1, k2, k3, k4 = jax.random.split(key, 4)
    w1, b1 = init_linear(k1, D_IN, H1)
    w2, b2 = init_linear(k2, H1, H2)
    w3, b3 = init_linear(k3, H2, H3)
    w4, b4 = init_linear(k4, H3, NUM_EXPERTS)
    # pad the final layer to a lane-dense 128-wide output (zeros beyond col 4)
    w4p = jnp.zeros((H3, E_PAD), jnp.float32).at[:, :NUM_EXPERTS].set(w4)
    b4p = jnp.zeros((1, E_PAD), jnp.float32).at[:, :NUM_EXPERTS].set(b4)
    q1, s1 = quantize_per_col(w1)
    q2, s2 = quantize_per_col(w2)
    q3, s3 = quantize_per_col(w3)
    q4, s4 = quantize_per_col(w4p)
    return (q1, s1, b1, q2, s2, b2, q3, s3, b3, q4, s4, b4p)


# ---------------- host-side balanced allocation (data-dependent control flow) -
# TODO(synk): this allocation scheme is inherently sequential Python control
# flow over variable-length pools; it has no clean Pallas equivalent and runs
# on host using the kernel-computed probabilities.
def balanced_allocate(probs_np, num_experts):
    n = probs_np.shape[0]
    min_per_expert = (n + 7) // 8
    remaining = n - min_per_expert * num_experts
    while remaining < 0 and min_per_expert > 0:
        min_per_expert -= 1
        remaining = n - min_per_expert * num_experts

    expert_choice = np.argmax(probs_np, axis=1)
    allocation_pool = [[] for _ in range(num_experts)]
    for idx, expert in enumerate(expert_choice):
        allocation_pool[int(expert)].append(idx)

    # pull candidates into under-filled experts
    for expert in range(num_experts):
        current = len(allocation_pool[expert])
        if current >= min_per_expert:
            continue
        need = min_per_expert - current
        candidates = []
        for other_expert in range(num_experts):
            if other_expert == expert:
                continue
            overflow = len(allocation_pool[other_expert]) - min_per_expert
            if overflow > 0:
                pool = allocation_pool[other_expert]
                other_probs = probs_np[pool, other_expert]
                sorted_indices = np.argsort(other_probs)[:overflow]
                candidates.extend([(pool[i], other_expert) for i in sorted_indices])
        candidate_scores = [probs_np[idx, expert] for idx, _ in candidates]
        sorted_candidates = sorted(zip(candidates, candidate_scores),
                                   key=lambda t: t[1], reverse=True)
        for (idx, src_expert), _ in sorted_candidates[:need]:
            allocation_pool[src_expert].remove(idx)
            allocation_pool[expert].append(idx)
            need -= 1
            if need == 0:
                break

    # trim overflow and redistribute the remainder by gate probability
    remaining_indices = []
    for expert in range(num_experts):
        if len(allocation_pool[expert]) > min_per_expert:
            keep = allocation_pool[expert][:min_per_expert]
            rem = allocation_pool[expert][min_per_expert:]
            allocation_pool[expert] = keep
            remaining_indices.extend(rem)
    # TODO(synk): the PyTorch source shadows `remaining` with a list here (it
    # would raise TypeError on `remaining // num_experts`); we use the intended
    # integer spare capacity n - min_per_expert * num_experts.
    cap = min_per_expert + remaining // num_experts + 1
    for idx in remaining_indices:
        valid_experts = [e for e in range(num_experts)
                         if len(allocation_pool[e]) < cap]
        if not valid_experts:
            valid_experts = list(range(num_experts))
        scores = [(e, probs_np[idx, e]) for e in valid_experts]
        chosen_expert = max(scores, key=lambda t: t[1])[0]
        allocation_pool[chosen_expert].append(idx)
    return allocation_pool


# ---------------- full forward ------------------------------------------------
def uniform_moe_router5_forward(x, params):
    n = x.shape[0]
    probs = gate_probs(x, params)                     # Pallas kernel (one call)
    probs_np = np.asarray(jax.device_get(probs))      # single host<->device sync
    # TODO(synk): in a real pipeline, dispatch gate_probs for batch i+1 before
    # this blocking device_get so the kernel is fully hidden behind host work.

    allocation_pool = balanced_allocate(probs_np, NUM_EXPERTS)

    counts = [len(pool) for pool in allocation_pool]
    total_allocated = sum(counts)
    assert total_allocated == n, f'Total allocated mismatch: {total_allocated}/{n}'
    perm = np.concatenate([np.asarray(p, dtype=np.int64) for p in allocation_pool])
    assert np.all(np.sort(perm) == np.arange(n)), 'Duplicate / missing indices found'

    # one batched device gather instead of NUM_EXPERTS separate gathers
    perm_dev = jnp.asarray(perm.astype(np.int32))
    gathered = jnp.take(x, perm_dev, axis=0)
    expert_data = []
    expert_indices = []
    off = 0
    for i in range(NUM_EXPERTS):
        c = counts[i]
        expert_indices.append(perm_dev[off:off + c])
        expert_data.append(gathered[off:off + c])
        off += c

    # distribution loss: counts * mean gate score of the assigned expert
    mean_gate_scores = np.zeros(NUM_EXPERTS, dtype=np.float32)
    for i in range(NUM_EXPERTS):
        if counts[i] > 0:
            mean_gate_scores[i] = probs_np[allocation_pool[i], i].mean()
    loss_val = (np.asarray(counts, dtype=np.float32) * mean_gate_scores).sum() / NUM_EXPERTS
    distribution_loss = jnp.asarray(loss_val, dtype=jnp.float32)
    return expert_data, distribution_loss, expert_indices


if __name__ == "__main__":
    key = jax.random.PRNGKey(0)
    kx, kp = jax.random.split(key)
    x = jax.random.normal(kx, (N_TOKENS, D_IN), dtype=jnp.float32)
    params = init_params(kp)

    expert_data, distribution_loss, expert_indices = uniform_moe_router5_forward(x, params)

    # block on everything
    for d in expert_data:
        jax.block_until_ready(d)
    jax.block_until_ready(distribution_loss)
    for idx in expert_indices:
        jax.block_until_ready(idx)

    print("KERNEL_OK")
</pallas_src>

<mosaic_0001>
module attributes {stable_mosaic.version = 11 : i64} {
  func.func @gate_kernel(%arg0: i32, %arg1: memref<16x256xbf16, #tpu.memory_space<vmem>>, %arg2: memref<256x1024xi8, #tpu.memory_space<vmem>>, %arg3: memref<1x1024xf32, #tpu.memory_space<vmem>>, %arg4: memref<1x1024xf32, #tpu.memory_space<vmem>>, %arg5: memref<1024x512xi8, #tpu.memory_space<vmem>>, %arg6: memref<1x512xf32, #tpu.memory_space<vmem>>, %arg7: memref<1x512xf32, #tpu.memory_space<vmem>>, %arg8: memref<512x128xi8, #tpu.memory_space<vmem>>, %arg9: memref<1x128xf32, #tpu.memory_space<vmem>>, %arg10: memref<1x128xf32, #tpu.memory_space<vmem>>, %arg11: memref<128x128xi8, #tpu.memory_space<vmem>>, %arg12: memref<1x128xf32, #tpu.memory_space<vmem>>, %arg13: memref<1x128xf32, #tpu.memory_space<vmem>>, %arg14: memref<16x128xf32, #tpu.memory_space<vmem>>) attributes {dimension_semantics = [#tpu.dimension_semantics<arbitrary>], iteration_bounds = array<i64: 1>, scalar_prefetch = 0 : i64, scratch_operands = 0 : i64, tpu.core_type = #tpu.core_type<tc>, window_params = [{pipeline_mode = #tpu.pipeline_mode<synchronous>, transform_indices = @transform_0, window_bounds = array<i64: 16, 256>}, {pipeline_mode = #tpu.pipeline_mode<synchronous>, transform_indices = @transform_1, window_bounds = array<i64: 256, 1024>}, {pipeline_mode = #tpu.pipeline_mode<synchronous>, transform_indices = @transform_2, window_bounds = array<i64: 1, 1024>}, {pipeline_mode = #tpu.pipeline_mode<synchronous>, transform_indices = @transform_3, window_bounds = array<i64: 1, 1024>}, {pipeline_mode = #tpu.pipeline_mode<synchronous>, transform_indices = @transform_4, window_bounds = array<i64: 1024, 512>}, {pipeline_mode = #tpu.pipeline_mode<synchronous>, transform_indices = @transform_5, window_bounds = array<i64: 1, 512>}, {pipeline_mode = #tpu.pipeline_mode<synchronous>, transform_indices = @transform_6, window_bounds = array<i64: 1, 512>}, {pipeline_mode = #tpu.pipeline_mode<synchronous>, transform_indices = @transform_7, window_bounds = array<i64: 512, 128>}, {pipeline_mode = #tpu.pipeline_mode<synchronous>, transform_indices = @transform_8, window_bounds = array<i64: 1, 128>}, {pipeline_mode = #tpu.pipeline_mode<synchronous>, transform_indices = @transform_9, window_bounds = array<i64: 1, 128>}, {pipeline_mode = #tpu.pipeline_mode<synchronous>, transform_indices = @transform_10, window_bounds = array<i64: 128, 128>}, {pipeline_mode = #tpu.pipeline_mode<synchronous>, transform_indices = @transform_11, window_bounds = array<i64: 1, 128>}, {pipeline_mode = #tpu.pipeline_mode<synchronous>, transform_indices = @transform_12, window_bounds = array<i64: 1, 128>}, {pipeline_mode = #tpu.pipeline_mode<synchronous>, transform_indices = @transform_13, window_bounds = array<i64: 16, 128>}]} {
    %c0 = arith.constant 0 : index
    %c0_0 = arith.constant 0 : index
    %0 = vector.load %arg1[%c0, %c0_0] : memref<16x256xbf16, #tpu.memory_space<vmem>>, vector<16x256xbf16>
    %c0_1 = arith.constant 0 : index
    %c0_2 = arith.constant 0 : index
    %1 = vector.load %arg2[%c0_1, %c0_2] : memref<256x1024xi8, #tpu.memory_space<vmem>>, vector<256x1024xi8>
    %2 = arith.sitofp %1 : vector<256x1024xi8> to vector<256x1024xbf16>
    %cst = arith.constant dense<0.000000e+00> : vector<16x1024xf32>
    %3 = tpu.matmul %0, %2, %cst {dimension_numbers = #tpu.dot_dimension_numbers<[1], [0], [0], [1], [0, 0, 1, 1], [], []>} : vector<16x256xbf16>, vector<256x1024xbf16>, vector<16x1024xf32> -> vector<16x1024xf32>
    %c0_3 = arith.constant 0 : index
    %c0_4 = arith.constant 0 : index
    %4 = vector.load %arg3[%c0_3, %c0_4] : memref<1x1024xf32, #tpu.memory_space<vmem>>, vector<1x1024xf32>
    %5 = vector.broadcast %4 : vector<1x1024xf32> to vector<16x1024xf32>
    %6 = arith.mulf %3, %5 : vector<16x1024xf32>
    %c0_5 = arith.constant 0 : index
    %c0_6 = arith.constant 0 : index
    %7 = vector.load %arg4[%c0_5, %c0_6] : memref<1x1024xf32, #tpu.memory_space<vmem>>, vector<1x1024xf32>
    %8 = vector.broadcast %7 : vector<1x1024xf32> to vector<16x1024xf32>
    %9 = arith.addf %6, %8 : vector<16x1024xf32>
    %cst_7 = arith.constant 0.000000e+00 : f32
    %10 = vector.broadcast %cst_7 : f32 to vector<16x1024xf32>
    %11 = arith.maximumf %9, %10 : vector<16x1024xf32>
    %12 = arith.truncf %11 : vector<16x1024xf32> to vector<16x1024xbf16>
    %c0_8 = arith.constant 0 : index
    %c0_9 = arith.constant 0 : index
    %13 = vector.load %arg5[%c0_8, %c0_9] : memref<1024x512xi8, #tpu.memory_space<vmem>>, vector<1024x512xi8>
    %14 = arith.sitofp %13 : vector<1024x512xi8> to vector<1024x512xbf16>
    %cst_10 = arith.constant dense<0.000000e+00> : vector<16x512xf32>
    %15 = tpu.matmul %12, %14, %cst_10 {dimension_numbers = #tpu.dot_dimension_numbers<[1], [0], [0], [1], [0, 0, 1, 1], [], []>} : vector<16x1024xbf16>, vector<1024x512xbf16>, vector<16x512xf32> -> vector<16x512xf32>
    %c0_11 = arith.constant 0 : index
    %c0_12 = arith.constant 0 : index
    %16 = vector.load %arg6[%c0_11, %c0_12] : memref<1x512xf32, #tpu.memory_space<vmem>>, vector<1x512xf32>
    %17 = vector.broadcast %16 : vector<1x512xf32> to vector<16x512xf32>
    %18 = arith.mulf %15, %17 : vector<16x512xf32>
    %c0_13 = arith.constant 0 : index
    %c0_14 = arith.constant 0 : index
    %19 = vector.load %arg7[%c0_13, %c0_14] : memref<1x512xf32, #tpu.memory_space<vmem>>, vector<1x512xf32>
    %20 = vector.broadcast %19 : vector<1x512xf32> to vector<16x512xf32>
    %21 = arith.addf %18, %20 : vector<16x512xf32>
    %cst_15 = arith.constant 0.000000e+00 : f32
    %22 = vector.broadcast %cst_15 : f32 to vector<16x512xf32>
    %23 = arith.maximumf %21, %22 : vector<16x512xf32>
    %24 = arith.truncf %23 : vector<16x512xf32> to vector<16x512xbf16>
    %c0_16 = arith.constant 0 : index
    %c0_17 = arith.constant 0 : index
    %25 = vector.load %arg8[%c0_16, %c0_17] : memref<512x128xi8, #tpu.memory_space<vmem>>, vector<512x128xi8>
    %26 = arith.sitofp %25 : vector<512x128xi8> to vector<512x128xbf16>
    %cst_18 = arith.constant dense<0.000000e+00> : vector<16x128xf32>
    %27 = tpu.matmul %24, %26, %cst_18 {dimension_numbers = #tpu.dot_dimension_numbers<[1], [0], [0], [1], [0, 0, 1, 1], [], []>} : vector<16x512xbf16>, vector<512x128xbf16>, vector<16x128xf32> -> vector<16x128xf32>
    %c0_19 = arith.constant 0 : index
    %c0_20 = arith.constant 0 : index
    %28 = vector.load %arg9[%c0_19, %c0_20] : memref<1x128xf32, #tpu.memory_space<vmem>>, vector<1x128xf32>
    %29 = vector.broadcast %28 : vector<1x128xf32> to vector<16x128xf32>
    %30 = arith.mulf %27, %29 : vector<16x128xf32>
    %c0_21 = arith.constant 0 : index
    %c0_22 = arith.constant 0 : index
    %31 = vector.load %arg10[%c0_21, %c0_22] : memref<1x128xf32, #tpu.memory_space<vmem>>, vector<1x128xf32>
    %32 = vector.broadcast %31 : vector<1x128xf32> to vector<16x128xf32>
    %33 = arith.addf %30, %32 : vector<16x128xf32>
    %cst_23 = arith.constant 0.000000e+00 : f32
    %34 = vector.broadcast %cst_23 : f32 to vector<16x128xf32>
    %35 = arith.maximumf %33, %34 : vector<16x128xf32>
    %36 = arith.truncf %35 : vector<16x128xf32> to vector<16x128xbf16>
    %c0_24 = arith.constant 0 : index
    %c0_25 = arith.constant 0 : index
    %37 = vector.load %arg11[%c0_24, %c0_25] : memref<128x128xi8, #tpu.memory_space<vmem>>, vector<128x128xi8>
    %38 = arith.sitofp %37 : vector<128x128xi8> to vector<128x128xbf16>
    %cst_26 = arith.constant dense<0.000000e+00> : vector<16x128xf32>
    %39 = tpu.matmul %36, %38, %cst_26 {dimension_numbers = #tpu.dot_dimension_numbers<[1], [0], [0], [1], [0, 0, 1, 1], [], []>} : vector<16x128xbf16>, vector<128x128xbf16>, vector<16x128xf32> -> vector<16x128xf32>
    %c0_27 = arith.constant 0 : index
    %c0_28 = arith.constant 0 : index
    %40 = vector.load %arg12[%c0_27, %c0_28] : memref<1x128xf32, #tpu.memory_space<vmem>>, vector<1x128xf32>
    %41 = vector.broadcast %40 : vector<1x128xf32> to vector<16x128xf32>
    %42 = arith.mulf %39, %41 : vector<16x128xf32>
    %c0_29 = arith.constant 0 : index
    %c0_30 = arith.constant 0 : index
    %43 = vector.load %arg13[%c0_29, %c0_30] : memref<1x128xf32, #tpu.memory_space<vmem>>, vector<1x128xf32>
    %44 = vector.broadcast %43 : vector<1x128xf32> to vector<16x128xf32>
    %45 = arith.addf %42, %44 : vector<16x128xf32>
    %46 = tpu.iota {dimensions = array<i32: 1>} : vector<16x128xi32>
    %c5_i32 = arith.constant 5 : i32
    %47 = vector.broadcast %c5_i32 : i32 to vector<16x128xi32>
    %48 = arith.cmpi slt, %46, %47 : vector<16x128xi32>
    %cst_31 = arith.constant -1.000000e+30 : f32
    %49 = vector.broadcast %cst_31 : f32 to vector<16x128xf32>
    %50 = arith.select %48, %45, %49 : vector<16x128xi1>, vector<16x128xf32>
    %cst_32 = arith.constant dense<0xFF800000> : vector<16xf32>
    %51 = vector.multi_reduction <maximumf>, %50, %cst_32 [1] : vector<16x128xf32> to vector<16xf32>
    %52 = vector.shape_cast %51 : vector<16xf32> to vector<16x1xf32>
    %53 = vector.broadcast %52 : vector<16x1xf32> to vector<16x128xf32>
    %54 = arith.subf %50, %53 : vector<16x128xf32>
    %55 = math.exp %54 : vector<16x128xf32>
    %cst_33 = arith.constant dense<0.000000e+00> : vector<16xf32>
    %56 = vector.multi_reduction <add>, %55, %cst_33 [1] : vector<16x128xf32> to vector<16xf32>
    %57 = vector.shape_cast %56 : vector<16xf32> to vector<16x1xf32>
    %58 = vector.broadcast %57 : vector<16x1xf32> to vector<16x128xf32>
    %59 = arith.divf %55, %58 : vector<16x128xf32>
    %c0_34 = arith.constant 0 : index
    %c0_35 = arith.constant 0 : index
    %60 = vector.load %arg14[%c0_34, %c0_35] : memref<16x128xf32, #tpu.memory_space<vmem>>, vector<16x128xf32>
    tpu.vector_store %arg14[%c0_34, %c0_35], %59 {strides = array<i32>} : memref<16x128xf32, #tpu.memory_space<vmem>>, vector<16x128xf32>,
    return
  }
  func.func @transform_0(%arg0: i32) -> (i32, i32) {
    %c0_i32 = arith.constant 0 : i32
    %c0_i32_0 = arith.constant 0 : i32
    %c0_i32_1 = arith.constant 0 : i32
    return %c0_i32, %c0_i32_0 : i32, i32
  }
  func.func @transform_1(%arg0: i32) -> (i32, i32) {
    %c0_i32 = arith.constant 0 : i32
    %c0_i32_0 = arith.constant 0 : i32
    %c0_i32_1 = arith.constant 0 : i32
    return %c0_i32, %c0_i32_0 : i32, i32
  }
  func.func @transform_2(%arg0: i32) -> (i32, i32) {
    %c0_i32 = arith.constant 0 : i32
    %c0_i32_0 = arith.constant 0 : i32
    %c0_i32_1 = arith.constant 0 : i32
    return %c0_i32, %c0_i32_0 : i32, i32
  }
  func.func @transform_3(%arg0: i32) -> (i32, i32) {
    %c0_i32 = arith.constant 0 : i32
    %c0_i32_0 = arith.constant 0 : i32
    %c0_i32_1 = arith.constant 0 : i32
    return %c0_i32, %c0_i32_0 : i32, i32
  }
  func.func @transform_4(%arg0: i32) -> (i32, i32) {
    %c0_i32 = arith.constant 0 : i32
    %c0_i32_0 = arith.constant 0 : i32
    %c0_i32_1 = arith.constant 0 : i32
    return %c0_i32, %c0_i32_0 : i32, i32
  }
  func.func @transform_5(%arg0: i32) -> (i32, i32) {
    %c0_i32 = arith.constant 0 : i32
    %c0_i32_0 = arith.constant 0 : i32
    %c0_i32_1 = arith.constant 0 : i32
    return %c0_i32, %c0_i32_0 : i32, i32
  }
  func.func @transform_6(%arg0: i32) -> (i32, i32) {
    %c0_i32 = arith.constant 0 : i32
    %c0_i32_0 = arith.constant 0 : i32
    %c0_i32_1 = arith.constant 0 : i32
    return %c0_i32, %c0_i32_0 : i32, i32
  }
  func.func @transform_7(%arg0: i32) -> (i32, i32) {
    %c0_i32 = arith.constant 0 : i32
    %c0_i32_0 = arith.constant 0 : i32
    %c0_i32_1 = arith.constant 0 : i32
    return %c0_i32, %c0_i32_0 : i32, i32
  }
  func.func @transform_8(%arg0: i32) -> (i32, i32) {
    %c0_i32 = arith.constant 0 : i32
    %c0_i32_0 = arith.constant 0 : i32
    %c0_i32_1 = arith.constant 0 : i32
    return %c0_i32, %c0_i32_0 : i32, i32
  }
  func.func @transform_9(%arg0: i32) -> (i32, i32) {
    %c0_i32 = arith.constant 0 : i32
    %c0_i32_0 = arith.constant 0 : i32
    %c0_i32_1 = arith.constant 0 : i32
    return %c0_i32, %c0_i32_0 : i32, i32
  }
  func.func @transform_10(%arg0: i32) -> (i32, i32) {
    %c0_i32 = arith.constant 0 : i32
    %c0_i32_0 = arith.constant 0 : i32
    %c0_i32_1 = arith.constant 0 : i32
    return %c0_i32, %c0_i32_0 : i32, i32
  }
  func.func @transform_11(%arg0: i32) -> (i32, i32) {
    %c0_i32 = arith.constant 0 : i32
    %c0_i32_0 = arith.constant 0 : i32
    %c0_i32_1 = arith.constant 0 : i32
    return %c0_i32, %c0_i32_0 : i32, i32
  }
  func.func @transform_12(%arg0: i32) -> (i32, i32) {
    %c0_i32 = arith.constant 0 : i32
    %c0_i32_0 = arith.constant 0 : i32
    %c0_i32_1 = arith.constant 0 : i32
    return %c0_i32, %c0_i32_0 : i32, i32
  }
  func.func @transform_13(%arg0: i32) -> (i32, i32) {
    %c0_i32 = arith.constant 0 : i32
    %c0_i32_0 = arith.constant 0 : i32
    %c0_i32_1 = arith.constant 0 : i32
    return %c0_i32, %c0_i32_0 : i32, i32
  }
}

</mosaic_0001>

<bundles_post_ra>
// kernel: tpu_custom_call.1
= control target key start
LH: loop header
LB: loop body
LE: loop exit
PB: predicated region body
PF: predicated region fallthrough
CT: control target
= control target key end

     0   :  { %18 = vsyncpa [#allocation3], 0  ;;  %s2265_s0 = inlined_call_operand.hbm [shape: bf16[16,256], index: 0, kind: input, shape index: {}]   ;;  %s2266_s1 = inlined_call_operand.hbm [shape: s8[256,1024], index: 1, kind: input, shape index: {}]   ;;  %s2267_s2 = inlined_call_operand.hbm [shape: f32[1,1024], index: 2, kind: input, shape index: {}]   ;;  %s2268_s3 = inlined_call_operand.hbm [shape: f32[1,1024], index: 3, kind: input, shape index: {}]   ;;  %s2269_s4 = inlined_call_operand.hbm [shape: s8[1024,512], index: 4, kind: input, shape index: {}]   ;;  %s2270_s5 = inlined_call_operand.vmem [shape: f32[1,512], index: 5, kind: input, shape index: {}]   ;;  %s2271_s6 = inlined_call_operand.vmem [shape: f32[1,512], index: 6, kind: input, shape index: {}]   ;;  %s2272_s7 = inlined_call_operand.hbm [shape: s8[512,128], index: 7, kind: input, shape index: {}]   ;;  %s2273_s8 = inlined_call_operand.vmem [shape: f32[1,128], index: 8, kind: input, shape index: {}]   ;;  %s2274_s9 = inlined_call_operand.vmem [shape: f32[1,128], index: 9, kind: input, shape index: {}]   ;;  %s2275_s10 = inlined_call_operand.hbm [shape: s8[128,128], index: 10, kind: input, shape index: {}]   ;;  %s2276_s11 = inlined_call_operand.vmem [shape: f32[1,128], index: 11, kind: input, shape index: {}]   ;;  %s2277_s12 = inlined_call_operand.vmem [shape: f32[1,128], index: 12, kind: input, shape index: {}]   ;;  %s2278_s13 = inlined_call_operand.hbm [shape: f32[16,128], index: 13, kind: output, shape index: {}]  }
   0x1   :  { %19 = vsyncpa [#allocation6], 0 }
   0x2   :  { %20 = vsyncpa [#allocation9], 0 }
   0x3   :  { %21 = vsyncpa [#allocation12], 0 }
   0x4   :  { %22 = vsyncpa [#allocation4], 0  ;;  %s1996_s25 = smov [#allocation5]  }
   0x5   :  { %s40_s26 = sshll.u32 %s1996_s25, 4  ;;  %s41_s26 = int_to_ptr.vmem [resolvable:$true] %s40_s26 }
   0x6   :  { %s1834_s27 = scalar_lea.vmem %s41_s26, 8192  ;;  %p1839_p1 = scmp.lt.s32.totalorder %s41_s26, %s41_s26 }
   0x7   :  { %p1835_p0 = scmp.ne.s32.totalorder %s41_s26, %s1834_s27  ;;  %p1840_p2 = scmp.lt.s32.totalorder %s1834_s27, %s1834_s27 }
   0x9   :  { %p1841_p3 = por %p1840_p2, %p1839_p1 }
   0xb   :  { %p1842_p4 = pnand %p1841_p3, %p1835_p0 }
   0xd   :  { %1845 = shalt.err (!%p1842_p4)
}
   0xe   :  { %s1997_s28 = smov 1024   ;;  %s1998_s29 = smov 64  }
   0xf   :  { %46 = dma.hbm_to_vmem [thread:$0]  %s2266_s1, 8192, %s41_s26, [#allocation6], %s1997_s28, %s1997_s28, %s1998_s29  }
  0x10   :  { %s1999_s15 = smov [#allocation8]  }
  0x11   :  { %s63_s16 = sshll.u32 %s1999_s15, 4  ;;  %s64_s16 = int_to_ptr.vmem [resolvable:$true] %s63_s16 }
  0x12   :  { %s1854_s17 = scalar_lea.vmem %s64_s16, 128  ;;  %p1859_p6 = scmp.lt.s32.totalorder %s64_s16, %s64_s16 }
  0x13   :  { %p1855_p5 = scmp.ne.s32.totalorder %s64_s16, %s1854_s17  ;;  %p1860_p7 = scmp.lt.s32.totalorder %s1854_s17, %s1854_s17 }
  0x15   :  { %p1861_p8 = por %p1860_p7, %p1859_p6 }
  0x17   :  { %p1862_p9 = pnand %p1861_p8, %p1855_p5 }
  0x19   :  { %1865 = shalt.err (!%p1862_p9)
}
  0x1a   :  { %66 = dma.hbm_to_vmem [thread:$0]  %s2268_s3, 128, %s64_s16, [#allocation9]  }
  0x1b   :  { %s2000_s20 = smov [#allocation11]   ;;  %s2001_s22 = smov [#allocation2]  }
  0x1c   :  { %s88_s21 = sshll.u32 %s2000_s20, 4  ;;  %s28_s23 = sshll.u32 %s2001_s22, 4  ;;  %s89_s21 = int_to_ptr.vmem [resolvable:$true] %s88_s21  ;;  %s29_s23 = int_to_ptr.vmem [resolvable:$true] %s28_s23 }
  0x1d   :  { %s1874_s1 = scalar_lea.vmem %s89_s21, 2048  ;;  %p1879_p11 = scmp.lt.s32.totalorder %s89_s21, %s89_s21 }
  0x1e   :  { %p1875_p10 = scmp.ne.s32.totalorder %s89_s21, %s1874_s1  ;;  %p1880_p12 = scmp.lt.s32.totalorder %s1874_s1, %s1874_s1 }
  0x20   :  { %p1881_p13 = por %p1880_p12, %p1879_p11 }
  0x22   :  { %p1882_p0 = pnand %p1881_p13, %p1875_p10 }
  0x24   :  { %1885 = shalt.err (!%p1882_p0)
}
  0x25   :  { %s2002_s24 = smov 128   ;;  %s2003_s25 = smov 8  }
  0x26   :  { %94 = dma.hbm_to_vmem [thread:$0]  %s2272_s7, 2048, %s89_s21, [#allocation12], %s2002_s24, %s2002_s24, %s2003_s25  }
  0x27   :  { %s1894_s27 = scalar_lea.vmem %s29_s23, 256  ;;  %p1899_p2 = scmp.lt.s32.totalorder %s29_s23, %s29_s23 }
  0x28   :  { %p1895_p1 = scmp.ne.s32.totalorder %s29_s23, %s1894_s27  ;;  %p1900_p3 = scmp.lt.s32.totalorder %s1894_s27, %s1894_s27 }
  0x2a   :  { %p1901_p4 = por %p1900_p3, %p1899_p2 }
  0x2c   :  { %p1902_p5 = pnand %p1901_p4, %p1895_p1 }
  0x2e   :  { %1905 = shalt.err (!%p1902_p5)
}
  0x2f   :  { %34 = dma.hbm_to_vmem [thread:$0]  %s2265_s0, 256, %s29_s23, [#allocation3], %s2002_s24, %s2002_s24, %s2003_s25  }
  0x30   :  { %s2004_s30 = smov [#allocation7]   ;;  %s2005_s15 = smov [#allocation10]  }
  0x31   :  { %s53_s14 = sshll.u32 %s2004_s30, 4  ;;  %s72_s16 = sshll.u32 %s2005_s15, 4  ;;  %s54_s14 = int_to_ptr.vmem [resolvable:$true] %s53_s14  ;;  %s73_s16 = int_to_ptr.vmem [resolvable:$true] %s72_s16 }
  0x32   :  { %s1914_s7 = scalar_lea.vmem %s54_s14, 128  ;;  %p1919_p7 = scmp.lt.s32.totalorder %s54_s14, %s54_s14 }
  0x33   :  { %p1915_p6 = scmp.ne.s32.totalorder %s54_s14, %s1914_s7  ;;  %p1920_p8 = scmp.lt.s32.totalorder %s1914_s7, %s1914_s7 }
  0x35   :  { %p1921_p9 = por %p1920_p8, %p1919_p7 }
  0x37   :  { %p1922_p10 = pnand %p1921_p9, %p1915_p6 }
  0x39   :  { %1925 = shalt.err (!%p1922_p10)
}
  0x3a   :  { %56 = dma.hbm_to_vmem [thread:$0]  %s2267_s2, 128, %s54_s14, [#allocation6]  }
  0x3b   :  { %s1934_s19 = scalar_lea.vmem %s73_s16, 16384  ;;  %p1939_p12 = scmp.lt.s32.totalorder %s73_s16, %s73_s16 }
  0x3c   :  { %p1935_p11 = scmp.ne.s32.totalorder %s73_s16, %s1934_s19  ;;  %p1940_p13 = scmp.lt.s32.totalorder %s1934_s19, %s1934_s19 }
  0x3e   :  { %p1941_p0 = por %p1940_p13, %p1939_p12 }
  0x40   :  { %p1942_p1 = pnand %p1941_p0, %p1935_p11 }
  0x42   :  { %1945 = shalt.err (!%p1942_p1)
}
  0x43   :  { %s2006_s0 = smov 512   ;;  %s2007_s20 = smov 32  }
  0x44   :  { %78 = dma.hbm_to_vmem [thread:$0]  %s2269_s4, 16384, %s73_s16, [#allocation9], %s2006_s0, %s2006_s0, %s2007_s20  }
  0x45   :  { %s2008_s23 = smov [#allocation13]  }
  0x46   :  { %s104_s1 = sshll.u32 %s2008_s23, 4  ;;  %s105_s1 = int_to_ptr.vmem [resolvable:$true] %s104_s1 }
  0x47   :  { %s1954_s26 = scalar_lea.vmem %s105_s1, 512  ;;  %p1959_p3 = scmp.lt.s32.totalorder %s105_s1, %s105_s1 }
  0x48   :  { %p1955_p2 = scmp.ne.s32.totalorder %s105_s1, %s1954_s26  ;;  %p1960_p4 = scmp.lt.s32.totalorder %s1954_s26, %s1954_s26 }
  0x4a   :  { %p1961_p5 = por %p1960_p4, %p1959_p3 }
  0x4c   :  { %p1962_p6 = pnand %p1961_p5, %p1955_p2 }
  0x4e   :  { %1965 = shalt.err (!%p1962_p6)
}
  0x4f   :  { %110 = dma.hbm_to_vmem [thread:$0]  %s2275_s10, 512, %s105_s1, [#allocation12], %s2002_s24, %s2002_s24, %s2003_s25  }
  0x50   :  { %1986 = dma.done.wait [#allocation3], 256  }
  0x51   :  { %1987 = vsyncadd [#allocation3], 4294967040 }
  0x52   :  { %1988 = dma.done.wait [#allocation6], 8320  }
  0x53   :  { %1989 = vsyncadd [#allocation6], 4294958976 }
  0x54   :  { %1990 = dma.done.wait [#allocation9], 16512  }
  0x55   :  { %1991 = vsyncadd [#allocation9], 4294950784 }
  0x56   :  { %1992 = dma.done.wait [#allocation12], 2560  }
  0x57   :  { %1993 = vsyncadd [#allocation12], 4294964736  ;;  %v164_v0 = vld [vmem:[#allocation5 + $0xc8] sm:$0xff]  ;;  %v166_v1 = vld [vmem:[#allocation5 + $0xd8] sm:$0xff]  ;;  %vm2010_vm0 = vmmov 0  }
  0x58   :  { %v163_v2 = vld [vmem:[#allocation5 + $0xc0] sm:$0xff]  ;;  %v252_v3 = vunpack.c.l.s8.bf16 %v164_v0  ;;  %v260_v4 = vunpack.c.h.s8.bf16 %v164_v0  ;;  %v254_v5 = vunpack.c.l.s8.bf16 %v166_v1  ;;  %v262_v6 = vunpack.c.h.s8.bf16 %v166_v1  ;;  %v165_v7 = vld [vmem:[#allocation5 + $0xd0] sm:$0xff]  ;;  %v156_v10 = vld [vmem:[#allocation5 + $0x88] sm:$0xff] }
  0x59   :  { %v259_v8 = vunpack.c.h.s8.bf16 %v163_v2  ;;  %v261_v9 = vunpack.c.h.s8.bf16 %v165_v7  ;;  %v158_v11 = vld [vmem:[#allocation5 + $0x98] sm:$0xff]  ;;  %v251_v12 = vunpack.c.l.s8.bf16 %v163_v2  ;;  %v253_v13 = vunpack.c.l.s8.bf16 %v165_v7  ;;  %v155_v16 = vld [vmem:[#allocation5 + $0x80] sm:$0xff]  ;;  %v157_v17 = vld [vmem:[#allocation5 + $0x90] sm:$0xff] }
  0x5a   :  { %341 = vmatprep.subr.bf16.mxu0 %v260_v4  ;;  %384 = vmatprep.subr.bf16.mxu1 %v262_v6  ;;  %v244_v14 = vunpack.c.h.s8.bf16 %v156_v10  ;;  %v246_v15 = vunpack.c.h.s8.bf16 %v158_v11  ;;  %v243_v18 = vunpack.c.h.s8.bf16 %v155_v16  ;;  %v245_v19 = vunpack.c.h.s8.bf16 %v157_v17  ;;  %v148_v22 = vld [vmem:[#allocation5 + $0x48] sm:$0xff]  ;;  %v150_v23 = vld [vmem:[#allocation5 + $0x58] sm:$0xff]  ;;  %v147_v29 = vld [vmem:[#allocation5 + $0x40] sm:$0xff] }
  0x5b   :  { %342 = vmatpush1.bf16.msra.mxu0 %v259_v8  ;;  %385 = vmatpush1.bf16.msra.mxu1 %v261_v9  ;;  %v236_v20 = vunpack.c.l.s8.bf16 %v156_v10  ;;  %v238_v21 = vunpack.c.l.s8.bf16 %v158_v11  ;;  %v2112_v24 = vld [vmem:[#allocation2 + $0x4] ss:$8 sps:$4 sm:$0xff]   ;;  %v235_v25 = vunpack.c.l.s8.bf16 %v155_v16  ;;  %v237_v26 = vunpack.c.l.s8.bf16 %v157_v17  ;;  %v140_v35 = vld [vmem:[#allocation5 + $0x8] sm:$0xff]  ;;  %v139_v41 = vld [vmem:[#allocation5] sm:$0xff] }
  0x5c   :  { %343 = vmatprep.subr.bf16.mxu0 %v252_v3  ;;  %386 = vmatprep.subr.bf16.mxu1 %v254_v5  ;;  %v228_v27 = vunpack.c.h.s8.bf16 %v148_v22  ;;  %v230_v28 = vunpack.c.h.s8.bf16 %v150_v23  ;;  %v149_v30 = vld [vmem:[#allocation5 + $0x50] sm:$0xff]  ;;  %v227_v31 = vunpack.c.h.s8.bf16 %v147_v29  ;;  %v220_v33 = vunpack.c.l.s8.bf16 %v148_v22  ;;  %v142_v36 = vld [vmem:[#allocation5 + $0x18] sm:$0xff]  ;;  %v196_v47 = vld [vmem:[#allocation5 + $0x1c8] sm:$0xff] }
  0x5d   :  { %373 = vmatprep.mubr.bf16.mxu0 %v2112_v24  ;;  %416 = vmatprep.mubr.bf16.mxu1 %v2112_v24  ;;  %v229_v32 = vunpack.c.h.s8.bf16 %v149_v30  ;;  %v222_v34 = vunpack.c.l.s8.bf16 %v150_v23  ;;  %v219_v37 = vunpack.c.l.s8.bf16 %v147_v29  ;;  %v221_v38 = vunpack.c.l.s8.bf16 %v149_v30  ;;  %v141_v42 = vld [vmem:[#allocation5 + $0x10] sm:$0xff]  ;;  %v198_v48 = vld [vmem:[#allocation5 + $0x1d8] sm:$0xff]  ;;  %v195_v53 = vld [vmem:[#allocation5 + $0x1c0] sm:$0xff] }
  0x5e   :  { %v212_v39 = vunpack.c.h.s8.bf16 %v140_v35  ;;  %v214_v40 = vunpack.c.h.s8.bf16 %v142_v36  ;;  %v211_v43 = vunpack.c.h.s8.bf16 %v139_v41  ;;  %v213_v44 = vunpack.c.h.s8.bf16 %v141_v42  ;;  %v197_v54 = vld [vmem:[#allocation5 + $0x1d0] sm:$0xff]  ;;  %v188_v59 = vld [vmem:[#allocation5 + $0x188] sm:$0xff]  ;;  %v190_v60 = vld [vmem:[#allocation5 + $0x198] sm:$0xff] }
  0x5f   :  { %344 = vmatpush1.bf16.msra.mxu0 %v251_v12  ;;  %387 = vmatpush1.bf16.msra.mxu1 %v253_v13  ;;  %v204_v45 = vunpack.c.l.s8.bf16 %v140_v35  ;;  %v206_v46 = vunpack.c.l.s8.bf16 %v142_v36  ;;  %v203_v49 = vunpack.c.l.s8.bf16 %v139_v41  ;;  %v205_v50 = vunpack.c.l.s8.bf16 %v141_v42  ;;  %v187_v1 = vld [vmem:[#allocation5 + $0x180] sm:$0xff]  ;;  %v189_v2 = vld [vmem:[#allocation5 + $0x190] sm:$0xff]  ;;  %v180_v7 = vld [vmem:[#allocation5 + $0x148] sm:$0xff] }
  0x60   :  { %345 = vmatprep.subr.bf16.mxu0 %v244_v14  ;;  %388 = vmatprep.subr.bf16.mxu1 %v246_v15  ;;  %v324_v51 = vunpack.c.h.s8.bf16 %v196_v47  ;;  %v326_v52 = vunpack.c.h.s8.bf16 %v198_v48  ;;  %v323_v55 = vunpack.c.h.s8.bf16 %v195_v53  ;;  %v325_v56 = vunpack.c.h.s8.bf16 %v197_v54  ;;  %v182_v8 = vld [vmem:[#allocation5 + $0x158] sm:$0xff]  ;;  %v179_v13 = vld [vmem:[#allocation5 + $0x140] sm:$0xff]  ;;  %v181_v14 = vld [vmem:[#allocation5 + $0x150] sm:$0xff] }
  0x61   :  { %v316_v57 = vunpack.c.l.s8.bf16 %v196_v47  ;;  %v318_v58 = vunpack.c.l.s8.bf16 %v198_v48  ;;  %v315_v61 = vunpack.c.l.s8.bf16 %v195_v53  ;;  %v317_v62 = vunpack.c.l.s8.bf16 %v197_v54 }
  0x62   :  { %v308_v63 = vunpack.c.h.s8.bf16 %v188_v59  ;;  %v310_v0 = vunpack.c.h.s8.bf16 %v190_v60  ;;  %v307_v3 = vunpack.c.h.s8.bf16 %v187_v1  ;;  %v309_v4 = vunpack.c.h.s8.bf16 %v189_v2 }
  0x63   :  { %346 = vmatpush1.bf16.msra.mxu0 %v243_v18  ;;  %389 = vmatpush1.bf16.msra.mxu1 %v245_v19  ;;  %v300_v5 = vunpack.c.l.s8.bf16 %v188_v59  ;;  %v302_v6 = vunpack.c.l.s8.bf16 %v190_v60  ;;  %v299_v9 = vunpack.c.l.s8.bf16 %v187_v1  ;;  %v301_v10 = vunpack.c.l.s8.bf16 %v189_v2  ;;  %v172_v19 = vld [vmem:[#allocation5 + $0x108] sm:$0xff] }
  0x64   :  { %347 = vmatprep.subr.bf16.mxu0 %v236_v20  ;;  %390 = vmatprep.subr.bf16.mxu1 %v238_v21  ;;  %v292_v11 = vunpack.c.h.s8.bf16 %v180_v7  ;;  %v294_v12 = vunpack.c.h.s8.bf16 %v182_v8  ;;  %v291_v15 = vunpack.c.h.s8.bf16 %v179_v13  ;;  %v293_v16 = vunpack.c.h.s8.bf16 %v181_v14  ;;  %v174_v20 = vld [vmem:[#allocation5 + $0x118] sm:$0xff] }
  0x65   :  { %v284_v17 = vunpack.c.l.s8.bf16 %v180_v7  ;;  %v286_v18 = vunpack.c.l.s8.bf16 %v182_v8  ;;  %v283_v21 = vunpack.c.l.s8.bf16 %v179_v13  ;;  %v285_v22 = vunpack.c.l.s8.bf16 %v181_v14 }
  0x66   :  { %v276_v23 = vunpack.c.h.s8.bf16 %v172_v19  ;;  %v268_v30 = vunpack.c.l.s8.bf16 %v172_v19 }
  0x67   :  { %348 = vmatpush1.bf16.msra.mxu0 %v235_v25  ;;  %391 = vmatpush1.bf16.msra.mxu1 %v237_v26  ;;  %v278_v25 = vunpack.c.h.s8.bf16 %v174_v20  ;;  %v171_v26 = vld [vmem:[#allocation5 + $0x100] sm:$0xff] }
  0x68   :  { %349 = vmatprep.subr.bf16.mxu0 %v228_v27  ;;  %392 = vmatprep.subr.bf16.mxu1 %v230_v28  ;;  %v173_v27 = vld [vmem:[#allocation5 + $0x110] sm:$0xff]  ;;  %v275_v28 = vunpack.c.h.s8.bf16 %v171_v26 }
  0x69   :  { %v277_v29 = vunpack.c.h.s8.bf16 %v173_v27  ;;  %v269_v35 = vunpack.c.l.s8.bf16 %v173_v27 }
  0x6b   :  { %350 = vmatpush1.bf16.msra.mxu0 %v227_v31  ;;  %393 = vmatpush1.bf16.msra.mxu1 %v229_v32  ;;  %v270_v31 = vunpack.c.l.s8.bf16 %v174_v20  ;;  %v168_v32 = vld [vmem:[#allocation5 + $0xe8] sm:$0xff] }
  0x6c   :  { %351 = vmatprep.subr.bf16.mxu0 %v220_v33  ;;  %394 = vmatprep.subr.bf16.mxu1 %v222_v34  ;;  %v170_v33 = vld [vmem:[#allocation5 + $0xf8] sm:$0xff]  ;;  %v267_v34 = vunpack.c.l.s8.bf16 %v171_v26  ;;  %v264_v36 = vunpack.c.h.s8.bf16 %v168_v32 }
  0x6f   :  { %352 = vmatpush1.bf16.msra.mxu0 %v219_v37  ;;  %395 = vmatpush1.bf16.msra.mxu1 %v221_v38  ;;  %v266_v37 = vunpack.c.h.s8.bf16 %v170_v33  ;;  %v167_v38 = vld [vmem:[#allocation5 + $0xe0] sm:$0xff] }
  0x70   :  { %353 = vmatprep.subr.bf16.mxu0 %v212_v39  ;;  %396 = vmatprep.subr.bf16.mxu1 %v214_v40  ;;  %v169_v39 = vld [vmem:[#allocation5 + $0xf0] sm:$0xff]  ;;  %v263_v41 = vunpack.c.h.s8.bf16 %v167_v38  ;;  %v255_v47 = vunpack.c.l.s8.bf16 %v167_v38 }
  0x71   :  { %v2116_v40 = vld [vmem:[#allocation2] ss:$8 sps:$4 sm:$0xff]   ;;  %v265_v42 = vunpack.c.h.s8.bf16 %v169_v39  ;;  %v257_v48 = vunpack.c.l.s8.bf16 %v169_v39 }
  0x73   :  { %354 = vmatpush1.bf16.msra.mxu0 %v211_v43  ;;  %397 = vmatpush1.bf16.msra.mxu1 %v213_v44  ;;  %v256_v43 = vunpack.c.l.s8.bf16 %v168_v32  ;;  %v258_v44 = vunpack.c.l.s8.bf16 %v170_v33 }
  0x74   :  { %355 = vmatprep.subr.bf16.mxu0 %v204_v45  ;;  %398 = vmatprep.subr.bf16.mxu1 %v206_v46  ;;  %v160_v45 = vld [vmem:[#allocation5 + $0xa8] sm:$0xff]  ;;  %v162_v46 = vld [vmem:[#allocation5 + $0xb8] sm:$0xff] }
  0x77   :  { %356 = vmatpush1.bf16.msra.mxu0 %v203_v49  ;;  %399 = vmatpush1.bf16.msra.mxu1 %v205_v50  ;;  %v248_v49 = vunpack.c.h.s8.bf16 %v160_v45  ;;  %v250_v50 = vunpack.c.h.s8.bf16 %v162_v46 }
  0x78   :  { %357 = vmatprep.subr.bf16.mxu0 %v324_v51  ;;  %400 = vmatprep.subr.bf16.mxu1 %v326_v52  ;;  %v159_v51 = vld [vmem:[#allocation5 + $0xa0] sm:$0xff]  ;;  %v161_v52 = vld [vmem:[#allocation5 + $0xb0] sm:$0xff] }
  0x79   :  { %v247_v53 = vunpack.c.h.s8.bf16 %v159_v51  ;;  %v249_v54 = vunpack.c.h.s8.bf16 %v161_v52  ;;  %v239_v59 = vunpack.c.l.s8.bf16 %v159_v51  ;;  %v241_v60 = vunpack.c.l.s8.bf16 %v161_v52 }
  0x7b   :  { %358 = vmatpush2.bf16.msra.mxu0 %v323_v55  ;;  %401 = vmatpush2.bf16.msra.mxu1 %v325_v56  ;;  %v240_v55 = vunpack.c.l.s8.bf16 %v160_v45  ;;  %v242_v56 = vunpack.c.l.s8.bf16 %v162_v46 }
  0x7c   :  { %359 = vmatprep.subr.bf16.mxu0 %v316_v57  ;;  %402 = vmatprep.subr.bf16.mxu1 %v318_v58  ;;  %v152_v57 = vld [vmem:[#allocation5 + $0x68] sm:$0xff]  ;;  %v154_v58 = vld [vmem:[#allocation5 + $0x78] sm:$0xff] }
  0x7d   :  { %v224_v2 = vunpack.c.l.s8.bf16 %v152_v57 }
  0x7f   :  { %360 = vmatpush2.bf16.msra.mxu0 %v315_v61  ;;  %403 = vmatpush2.bf16.msra.mxu1 %v317_v62  ;;  %v232_v61 = vunpack.c.h.s8.bf16 %v152_v57  ;;  %v234_v62 = vunpack.c.h.s8.bf16 %v154_v58 }
  0x80   :  { %361 = vmatprep.subr.bf16.mxu0 %v308_v63  ;;  %404 = vmatprep.subr.bf16.mxu1 %v310_v0  ;;  %v151_v63 = vld [vmem:[#allocation5 + $0x60] sm:$0xff] }
  0x81   :  { %v231_v0 = vunpack.c.h.s8.bf16 %v151_v63 }
  0x83   :  { %362 = vmatpush2.bf16.msra.mxu0 %v307_v3  ;;  %405 = vmatpush2.bf16.msra.mxu1 %v309_v4  ;;  %v226_v3 = vunpack.c.l.s8.bf16 %v154_v58  ;;  %v144_v4 = vld [vmem:[#allocation5 + $0x28] sm:$0xff] }
  0x84   :  { %363 = vmatprep.subr.bf16.mxu0 %v300_v5  ;;  %406 = vmatprep.subr.bf16.mxu1 %v302_v6  ;;  %v146_v5 = vld [vmem:[#allocation5 + $0x38] sm:$0xff]  ;;  %v223_v6 = vunpack.c.l.s8.bf16 %v151_v63  ;;  %v216_v8 = vunpack.c.h.s8.bf16 %v144_v4  ;;  %v208_v14 = vunpack.c.l.s8.bf16 %v144_v4 }
  0x87   :  { %364 = vmatpush2.bf16.msra.mxu0 %v299_v9  ;;  %407 = vmatpush2.bf16.msra.mxu1 %v301_v10  ;;  %v218_v9 = vunpack.c.h.s8.bf16 %v146_v5  ;;  %v143_v10 = vld [vmem:[#allocation5 + $0x20] sm:$0xff] }
  0x88   :  { %365 = vmatprep.subr.bf16.mxu0 %v292_v11  ;;  %408 = vmatprep.subr.bf16.mxu1 %v294_v12  ;;  %v145_v11 = vld [vmem:[#allocation5 + $0x30] sm:$0xff]  ;;  %v215_v12 = vunpack.c.h.s8.bf16 %v143_v10 }
  0x89   :  { %v217_v13 = vunpack.c.h.s8.bf16 %v145_v11  ;;  %v209_v19 = vunpack.c.l.s8.bf16 %v145_v11 }
  0x8b   :  { %366 = vmatpush2.bf16.msra.mxu0 %v291_v15  ;;  %409 = vmatpush2.bf16.msra.mxu1 %v293_v16  ;;  %v210_v15 = vunpack.c.l.s8.bf16 %v146_v5  ;;  %v200_v16 = vld [vmem:[#allocation5 + $0x1e8] sm:$0xff] }
  0x8c   :  { %367 = vmatprep.subr.bf16.mxu0 %v284_v17  ;;  %410 = vmatprep.subr.bf16.mxu1 %v286_v18  ;;  %v202_v17 = vld [vmem:[#allocation5 + $0x1f8] sm:$0xff]  ;;  %v207_v18 = vunpack.c.l.s8.bf16 %v143_v10  ;;  %v328_v20 = vunpack.c.h.s8.bf16 %v200_v16  ;;  %v320_v27 = vunpack.c.l.s8.bf16 %v200_v16 }
  0x8f   :  { %368 = vmatpush2.bf16.msra.mxu0 %v283_v21  ;;  %411 = vmatpush2.bf16.msra.mxu1 %v285_v22  ;;  %v330_v21 = vunpack.c.h.s8.bf16 %v202_v17  ;;  %v199_v22 = vld [vmem:[#allocation5 + $0x1e0] sm:$0xff] }
  0x90   :  { %369 = vmatprep.subr.bf16.mxu0 %v276_v23  ;;  %412 = vmatprep.subr.bf16.mxu1 %v278_v25  ;;  %v201_v23 = vld [vmem:[#allocation5 + $0x1f0] sm:$0xff]  ;;  %v327_v25 = vunpack.c.h.s8.bf16 %v199_v22 }
  0x91   :  { %v329_v26 = vunpack.c.h.s8.bf16 %v201_v23  ;;  %v321_v32 = vunpack.c.l.s8.bf16 %v201_v23 }
  0x93   :  { %370 = vmatpush2.bf16.msra.mxu0 %v275_v28  ;;  %413 = vmatpush2.bf16.msra.mxu1 %v277_v29  ;;  %v322_v28 = vunpack.c.l.s8.bf16 %v202_v17  ;;  %v192_v29 = vld [vmem:[#allocation5 + $0x1a8] sm:$0xff] }
  0x94   :  { %371 = vmatprep.subr.bf16.mxu0 %v268_v30  ;;  %414 = vmatprep.subr.bf16.mxu1 %v270_v31  ;;  %v194_v30 = vld [vmem:[#allocation5 + $0x1b8] sm:$0xff]  ;;  %v319_v31 = vunpack.c.l.s8.bf16 %v199_v22  ;;  %v312_v33 = vunpack.c.h.s8.bf16 %v192_v29  ;;  %v304_v39 = vunpack.c.l.s8.bf16 %v192_v29 }
  0x97   :  { %372 = vmatpush2.bf16.msra.mxu0 %v267_v34  ;;  %415 = vmatpush2.bf16.msra.mxu1 %v269_v35  ;;  %v314_v34 = vunpack.c.h.s8.bf16 %v194_v30  ;;  %v191_v35 = vld [vmem:[#allocation5 + $0x1a0] sm:$0xff] }
  0x98   :  { %427 = vmatprep.subr.bf16.mxu0 %v264_v36  ;;  %470 = vmatprep.subr.bf16.mxu1 %v266_v37  ;;  %v193_v36 = vld [vmem:[#allocation5 + $0x1b0] sm:$0xff]  ;;  %v311_v37 = vunpack.c.h.s8.bf16 %v191_v35 }
  0x99   :  { %v313_v38 = vunpack.c.h.s8.bf16 %v193_v36  ;;  %v305_v45 = vunpack.c.l.s8.bf16 %v193_v36 }
  0x9a   :  { %374 = vmatmul.mubr.bf16.vlgmr.msra.gmra.mxu0 %v2116_v40  ;;  %417 = vmatmul.mubr.bf16.vlgmr.msra.gmra.mxu1 %v2116_v40 }
  0x9b   :  { %428 = vmatpush1.bf16.msra.mxu0 %v263_v41  ;;  %471 = vmatpush1.bf16.msra.mxu1 %v265_v42  ;;  %v306_v41 = vunpack.c.l.s8.bf16 %v194_v30  ;;  %v184_v42 = vld [vmem:[#allocation5 + $0x168] sm:$0xff] }
  0x9c   :  { %429 = vmatprep.subr.bf16.mxu0 %v256_v43  ;;  %472 = vmatprep.subr.bf16.mxu1 %v258_v44  ;;  %v186_v43 = vld [vmem:[#allocation5 + $0x178] sm:$0xff]  ;;  %v303_v44 = vunpack.c.l.s8.bf16 %v191_v35  ;;  %v296_v46 = vunpack.c.h.s8.bf16 %v184_v42  ;;  %v288_v52 = vunpack.c.l.s8.bf16 %v184_v42 }
  0x9d   :  { %459 = vmatprep.mubr.bf16.mxu0 %v2112_v24  ;;  %502 = vmatprep.mubr.bf16.mxu1 %v2112_v24  ;;  %v153_v24 = vld [vmem:[#allocation5 + $0x70] sm:$0xff] }
  0x9e   :  { %v233_v1 = vunpack.c.h.s8.bf16 %v153_v24  ;;  %v225_v7 = vunpack.c.l.s8.bf16 %v153_v24 }
  0x9f   :  { %430 = vmatpush1.bf16.msra.mxu0 %v255_v47  ;;  %473 = vmatpush1.bf16.msra.mxu1 %v257_v48  ;;  %v298_v47 = vunpack.c.h.s8.bf16 %v186_v43  ;;  %v183_v48 = vld [vmem:[#allocation5 + $0x160] sm:$0xff] }
  0xa0   :  { %431 = vmatprep.subr.bf16.mxu0 %v248_v49  ;;  %474 = vmatprep.subr.bf16.mxu1 %v250_v50  ;;  %v185_v49 = vld [vmem:[#allocation5 + $0x170] sm:$0xff]  ;;  %v295_v50 = vunpack.c.h.s8.bf16 %v183_v48 }
  0xa1   :  { %v297_v51 = vunpack.c.h.s8.bf16 %v185_v49  ;;  %v289_v57 = vunpack.c.l.s8.bf16 %v185_v49 }
  0xa3   :  { %432 = vmatpush1.bf16.msra.mxu0 %v247_v53  ;;  %475 = vmatpush1.bf16.msra.mxu1 %v249_v54  ;;  %v290_v53 = vunpack.c.l.s8.bf16 %v186_v43  ;;  %v176_v54 = vld [vmem:[#allocation5 + $0x128] sm:$0xff] }
  0xa4   :  { %433 = vmatprep.subr.bf16.mxu0 %v240_v55  ;;  %476 = vmatprep.subr.bf16.mxu1 %v242_v56  ;;  %v178_v55 = vld [vmem:[#allocation5 + $0x138] sm:$0xff]  ;;  %v287_v56 = vunpack.c.l.s8.bf16 %v183_v48  ;;  %v280_v58 = vunpack.c.h.s8.bf16 %v176_v54  ;;  %v272_v24 = vunpack.c.l.s8.bf16 %v176_v54 }
  0xa7   :  { %434 = vmatpush1.bf16.msra.mxu0 %v239_v59  ;;  %477 = vmatpush1.bf16.msra.mxu1 %v241_v60  ;;  %v282_v59 = vunpack.c.h.s8.bf16 %v178_v55  ;;  %v175_v60 = vld [vmem:[#allocation5 + $0x120] sm:$0xff] }
  0xa8   :  { %435 = vmatprep.subr.bf16.mxu0 %v232_v61  ;;  %478 = vmatprep.subr.bf16.mxu1 %v234_v62  ;;  %v177_v61 = vld [vmem:[#allocation5 + $0x130] sm:$0xff]  ;;  %v279_v62 = vunpack.c.h.s8.bf16 %v175_v60 }
  0xa9   :  { %v281_v63 = vunpack.c.h.s8.bf16 %v177_v61  ;;  %v273_v4 = vunpack.c.l.s8.bf16 %v177_v61 }
  0xab   :  { %436 = vmatpush1.bf16.msra.mxu0 %v231_v0  ;;  %479 = vmatpush1.bf16.msra.mxu1 %v233_v1  ;;  %v274_v0 = vunpack.c.l.s8.bf16 %v178_v55  ;;  %v666_v1 = vld [vmem:[#allocation10 + $0x68] sm:$0xff] }
  0xac   :  { %437 = vmatprep.subr.bf16.mxu0 %v224_v2  ;;  %480 = vmatprep.subr.bf16.mxu1 %v226_v3  ;;  %v698_v2 = vld [vmem:[#allocation10 + $0x168] sm:$0xff]  ;;  %v271_v3 = vunpack.c.l.s8.bf16 %v175_v60  ;;  %v810_v5 = vunpack.c.h.s8.bf16 %v666_v1  ;;  %v806_v11 = vunpack.c.l.s8.bf16 %v666_v1 }
  0xaf   :  { %438 = vmatpush1.bf16.msra.mxu0 %v223_v6  ;;  %481 = vmatpush1.bf16.msra.mxu1 %v225_v7  ;;  %v874_v6 = vunpack.c.h.s8.bf16 %v698_v2  ;;  %v665_v7 = vld [vmem:[#allocation10 + $0x60] sm:$0xff] }
  0xb0   :  { %439 = vmatprep.subr.bf16.mxu0 %v216_v8  ;;  %482 = vmatprep.subr.bf16.mxu1 %v218_v9  ;;  %v697_v8 = vld [vmem:[#allocation10 + $0x160] sm:$0xff]  ;;  %v809_v9 = vunpack.c.h.s8.bf16 %v665_v7 }
  0xb1   :  { %v873_v10 = vunpack.c.h.s8.bf16 %v697_v8  ;;  %v869_v16 = vunpack.c.l.s8.bf16 %v697_v8 }
  0xb3   :  { %440 = vmatpush1.bf16.msra.mxu0 %v215_v12  ;;  %483 = vmatpush1.bf16.msra.mxu1 %v217_v13  ;;  %v870_v12 = vunpack.c.l.s8.bf16 %v698_v2  ;;  %v662_v13 = vld [vmem:[#allocation10 + $0x48] sm:$0xff] }
  0xb4   :  { %441 = vmatprep.subr.bf16.mxu0 %v208_v14  ;;  %484 = vmatprep.subr.bf16.mxu1 %v210_v15  ;;  %v694_v14 = vld [vmem:[#allocation10 + $0x148] sm:$0xff]  ;;  %v805_v15 = vunpack.c.l.s8.bf16 %v665_v7  ;;  %v802_v17 = vunpack.c.h.s8.bf16 %v662_v13  ;;  %v798_v23 = vunpack.c.l.s8.bf16 %v662_v13 }
  0xb7   :  { %442 = vmatpush1.bf16.msra.mxu0 %v207_v18  ;;  %485 = vmatpush1.bf16.msra.mxu1 %v209_v19  ;;  %v866_v18 = vunpack.c.h.s8.bf16 %v694_v14  ;;  %v661_v19 = vld [vmem:[#allocation10 + $0x40] sm:$0xff] }
  0xb8   :  { %443 = vmatprep.subr.bf16.mxu0 %v328_v20  ;;  %486 = vmatprep.subr.bf16.mxu1 %v330_v21  ;;  %v693_v20 = vld [vmem:[#allocation10 + $0x140] sm:$0xff]  ;;  %v801_v21 = vunpack.c.h.s8.bf16 %v661_v19 }
  0xb9   :  { %v865_v22 = vunpack.c.h.s8.bf16 %v693_v20 }
  0xbb   :  { %444 = vmatpush2.bf16.msra.mxu0 %v327_v25  ;;  %487 = vmatpush2.bf16.msra.mxu1 %v329_v26  ;;  %v862_v25 = vunpack.c.l.s8.bf16 %v694_v14  ;;  %v658_v26 = vld [vmem:[#allocation10 + $0x28] sm:$0xff] }
  0xbc   :  { %445 = vmatprep.subr.bf16.mxu0 %v320_v27  ;;  %488 = vmatprep.subr.bf16.mxu1 %v322_v28  ;;  %v797_v27 = vunpack.c.l.s8.bf16 %v661_v19  ;;  %v861_v28 = vunpack.c.l.s8.bf16 %v693_v20  ;;  %v794_v29 = vunpack.c.h.s8.bf16 %v658_v26  ;;  %v790_v35 = vunpack.c.l.s8.bf16 %v658_v26 }
  0xbf   :  { %446 = vmatpush2.bf16.msra.mxu0 %v319_v31  ;;  %489 = vmatpush2.bf16.msra.mxu1 %v321_v32  ;;  %v657_v31 = vld [vmem:[#allocation10 + $0x20] sm:$0xff] }
  0xc0   :  { %447 = vmatprep.subr.bf16.mxu0 %v312_v33  ;;  %490 = vmatprep.subr.bf16.mxu1 %v314_v34  ;;  %v689_v32 = vld [vmem:[#allocation10 + $0x120] sm:$0xff]  ;;  %v793_v33 = vunpack.c.h.s8.bf16 %v657_v31 }
  0xc1   :  { %v857_v34 = vunpack.c.h.s8.bf16 %v689_v32 }
  0xc3   :  { %448 = vmatpush2.bf16.msra.mxu0 %v311_v37  ;;  %491 = vmatpush2.bf16.msra.mxu1 %v313_v38  ;;  %v654_v37 = vld [vmem:[#allocation10 + $0x8] sm:$0xff] }
  0xc4   :  { %449 = vmatprep.subr.bf16.mxu0 %v304_v39  ;;  %492 = vmatprep.subr.bf16.mxu1 %v306_v41  ;;  %v686_v38 = vld [vmem:[#allocation10 + $0x108] sm:$0xff]  ;;  %v789_v39 = vunpack.c.l.s8.bf16 %v657_v31  ;;  %v853_v41 = vunpack.c.l.s8.bf16 %v689_v32  ;;  %v786_v42 = vunpack.c.h.s8.bf16 %v654_v37  ;;  %v782_v48 = vunpack.c.l.s8.bf16 %v654_v37 }
  0xc5   :  { %v850_v43 = vunpack.c.h.s8.bf16 %v686_v38  ;;  %v846_v49 = vunpack.c.l.s8.bf16 %v686_v38 }
  0xc7   :  { %450 = vmatpush2.bf16.msra.mxu0 %v303_v44  ;;  %493 = vmatpush2.bf16.msra.mxu1 %v305_v45  ;;  %v653_v44 = vld [vmem:[#allocation10] sm:$0xff] }
  0xc8   :  { %451 = vmatprep.subr.bf16.mxu0 %v296_v46  ;;  %494 = vmatprep.subr.bf16.mxu1 %v298_v47  ;;  %v685_v45 = vld [vmem:[#allocation10 + $0x100] sm:$0xff]  ;;  %v785_v46 = vunpack.c.h.s8.bf16 %v653_v44 }
  0xc9   :  { %v849_v47 = vunpack.c.h.s8.bf16 %v685_v45 }
  0xcb   :  { %452 = vmatpush2.bf16.msra.mxu0 %v295_v50  ;;  %495 = vmatpush2.bf16.msra.mxu1 %v297_v51  ;;  %v682_v50 = vld [vmem:[#allocation10 + $0xe8] sm:$0xff] }
  0xcc   :  { %453 = vmatprep.subr.bf16.mxu0 %v288_v52  ;;  %496 = vmatprep.subr.bf16.mxu1 %v290_v53  ;;  %v714_v51 = vld [vmem:[#allocation10 + $0x1e8] sm:$0xff]  ;;  %v781_v52 = vunpack.c.l.s8.bf16 %v653_v44  ;;  %v845_v53 = vunpack.c.l.s8.bf16 %v685_v45  ;;  %v842_v54 = vunpack.c.h.s8.bf16 %v682_v50  ;;  %v838_v60 = vunpack.c.l.s8.bf16 %v682_v50 }
  0xcd   :  { %v906_v55 = vunpack.c.h.s8.bf16 %v714_v51  ;;  %v902_v61 = vunpack.c.l.s8.bf16 %v714_v51 }
  0xcf   :  { %454 = vmatpush2.bf16.msra.mxu0 %v287_v56  ;;  %497 = vmatpush2.bf16.msra.mxu1 %v289_v57  ;;  %v681_v56 = vld [vmem:[#allocation10 + $0xe0] sm:$0xff] }
  0xd0   :  { %455 = vmatprep.subr.bf16.mxu0 %v280_v58  ;;  %498 = vmatprep.subr.bf16.mxu1 %v282_v59  ;;  %v713_v57 = vld [vmem:[#allocation10 + $0x1e0] sm:$0xff]  ;;  %v841_v58 = vunpack.c.h.s8.bf16 %v681_v56 }
  0xd1   :  { %v905_v59 = vunpack.c.h.s8.bf16 %v713_v57 }
  0xd3   :  { %456 = vmatpush2.bf16.msra.mxu0 %v279_v62  ;;  %499 = vmatpush2.bf16.msra.mxu1 %v281_v63  ;;  %v678_v62 = vld [vmem:[#allocation10 + $0xc8] sm:$0xff] }
  0xd4   :  { %457 = vmatprep.subr.bf16.mxu0 %v272_v24  ;;  %500 = vmatprep.subr.bf16.mxu1 %v274_v0  ;;  %v710_v63 = vld [vmem:[#allocation10 + $0x1c8] sm:$0xff]  ;;  %v837_v24 = vunpack.c.l.s8.bf16 %v681_v56  ;;  %v901_v0 = vunpack.c.l.s8.bf16 %v713_v57  ;;  %v834_v1 = vunpack.c.h.s8.bf16 %v678_v62  ;;  %v830_v7 = vunpack.c.l.s8.bf16 %v678_v62 }
  0xd5   :  { %v898_v2 = vunpack.c.h.s8.bf16 %v710_v63  ;;  %v894_v8 = vunpack.c.l.s8.bf16 %v710_v63 }
  0xd7   :  { %458 = vmatpush2.bf16.msra.mxu0 %v271_v3  ;;  %501 = vmatpush2.bf16.msra.mxu1 %v273_v4  ;;  %v677_v3 = vld [vmem:[#allocation10 + $0xc0] sm:$0xff] }
  0xd8   :  { %1037 = vmatprep.subr.bf16.mxu0 %v810_v5  ;;  %1080 = vmatprep.subr.bf16.mxu1 %v874_v6  ;;  %v709_v4 = vld [vmem:[#allocation10 + $0x1c0] sm:$0xff]  ;;  %v833_v5 = vunpack.c.h.s8.bf16 %v677_v3 }
  0xd9   :  { %v897_v6 = vunpack.c.h.s8.bf16 %v709_v4 }
  0xda   :  { %460 = vmatmul.mubr.bf16.vlgmr.msra.gmra.mxu0 %v2116_v40  ;;  %503 = vmatmul.mubr.bf16.vlgmr.msra.gmra.mxu1 %v2116_v40  ;;  %v690_v40 = vld [vmem:[#allocation10 + $0x128] sm:$0xff] }
  0xdb   :  { %1038 = vmatpush1.bf16.msra.mxu0 %v809_v9  ;;  %1081 = vmatpush1.bf16.msra.mxu1 %v873_v10  ;;  %v858_v30 = vunpack.c.h.s8.bf16 %v690_v40  ;;  %v854_v36 = vunpack.c.l.s8.bf16 %v690_v40  ;;  %v674_v9 = vld [vmem:[#allocation10 + $0xa8] sm:$0xff] }
  0xdc   :  { %1039 = vmatprep.subr.bf16.mxu0 %v806_v11  ;;  %1082 = vmatprep.subr.bf16.mxu1 %v870_v12  ;;  %v706_v10 = vld [vmem:[#allocation10 + $0x1a8] sm:$0xff]  ;;  %v829_v11 = vunpack.c.l.s8.bf16 %v677_v3  ;;  %v893_v12 = vunpack.c.l.s8.bf16 %v709_v4  ;;  %v826_v13 = vunpack.c.h.s8.bf16 %v674_v9  ;;  %v822_v19 = vunpack.c.l.s8.bf16 %v674_v9 }
  0xdd   :  { %v890_v14 = vunpack.c.h.s8.bf16 %v706_v10  ;;  %v886_v20 = vunpack.c.l.s8.bf16 %v706_v10 }
  0xdf   :  { %1040 = vmatpush1.bf16.msra.mxu0 %v805_v15  ;;  %1083 = vmatpush1.bf16.msra.mxu1 %v869_v16  ;;  %v673_v15 = vld [vmem:[#allocation10 + $0xa0] sm:$0xff] }
  0xe0   :  { %1041 = vmatprep.subr.bf16.mxu0 %v802_v17  ;;  %1084 = vmatprep.subr.bf16.mxu1 %v866_v18  ;;  %v705_v16 = vld [vmem:[#allocation10 + $0x1a0] sm:$0xff]  ;;  %v825_v17 = vunpack.c.h.s8.bf16 %v673_v15 }
  0xe1   :  { %v889_v18 = vunpack.c.h.s8.bf16 %v705_v16 }
  0xe3   :  { %1042 = vmatpush1.bf16.msra.mxu0 %v801_v21  ;;  %1085 = vmatpush1.bf16.msra.mxu1 %v865_v22  ;;  %v670_v21 = vld [vmem:[#allocation10 + $0x88] sm:$0xff] }
  0xe4   :  { %1043 = vmatprep.subr.bf16.mxu0 %v798_v23  ;;  %1086 = vmatprep.subr.bf16.mxu1 %v862_v25  ;;  %v702_v22 = vld [vmem:[#allocation10 + $0x188] sm:$0xff]  ;;  %v821_v23 = vunpack.c.l.s8.bf16 %v673_v15  ;;  %v885_v25 = vunpack.c.l.s8.bf16 %v705_v16  ;;  %v818_v26 = vunpack.c.h.s8.bf16 %v670_v21  ;;  %v814_v31 = vunpack.c.l.s8.bf16 %v670_v21 }
  0xe5   :  { %v882_v40 = vunpack.c.h.s8.bf16 %v702_v22  ;;  %v878_v32 = vunpack.c.l.s8.bf16 %v702_v22 }
  0xe7   :  { %1044 = vmatpush1.bf16.msra.mxu0 %v797_v27  ;;  %1087 = vmatpush1.bf16.msra.mxu1 %v861_v28  ;;  %v669_v27 = vld [vmem:[#allocation10 + $0x80] sm:$0xff] }
  0xe8   :  { %1045 = vmatprep.subr.bf16.mxu0 %v794_v29  ;;  %1088 = vmatprep.subr.bf16.mxu1 %v858_v30  ;;  %v701_v28 = vld [vmem:[#allocation10 + $0x180] sm:$0xff]  ;;  %v817_v29 = vunpack.c.h.s8.bf16 %v669_v27 }
  0xe9   :  { %v881_v30 = vunpack.c.h.s8.bf16 %v701_v28 }
  0xeb   :  { %1046 = vmatpush1.bf16.msra.mxu0 %v793_v33  ;;  %1089 = vmatpush1.bf16.msra.mxu1 %v857_v34  ;;  %v2124_v33 = vld [vmem:[#allocation10 + $0x268] sm:$0xff] }
  0xec   :  { %1047 = vmatprep.subr.bf16.mxu0 %v790_v35  ;;  %1090 = vmatprep.subr.bf16.mxu1 %v854_v36  ;;  %v2126_v34 = vld [vmem:[#allocation10 + $0x368] sm:$0xff]  ;;  %v813_v35 = vunpack.c.l.s8.bf16 %v669_v27  ;;  %v877_v36 = vunpack.c.l.s8.bf16 %v701_v28  ;;  %v938_v37 = vunpack.c.h.s8.bf16 %v2124_v33 }
  0xed   :  { %v1002_v38 = vunpack.c.h.s8.bf16 %v2126_v34 }
  0xef   :  { %1048 = vmatpush1.bf16.msra.mxu0 %v789_v39  ;;  %1091 = vmatpush1.bf16.msra.mxu1 %v853_v41  ;;  %v515_v39 = vlaneseq }
  0xf0   :  { %1049 = vmatprep.subr.bf16.mxu0 %v786_v42  ;;  %1092 = vmatprep.subr.bf16.mxu1 %v850_v43 }
  0xf1   :  { %v2131_v41 = vshrl.u32 %v515_v39, 7 }
  0xf3   :  { %1050 = vmatpush1.bf16.msra.mxu0 %v785_v46  ;;  %1093 = vmatpush1.bf16.msra.mxu1 %v849_v47  ;;  %v2134_v42 = vsub.s32 1, %v2131_v41  ;;  %v2137_v43 = vsub.s32 3, %v2131_v41  ;;  %v2140_v44 = vsub.s32 0, %v2131_v41  ;;  %v2143_v45 = vsub.s32 2, %v2131_v41  ;;  %v2145_v46 = vld [vmem:[#allocation7] sm:$0xff] }
  0xf4   :  { %1051 = vmatprep.subr.bf16.mxu0 %v782_v48  ;;  %1094 = vmatprep.subr.bf16.mxu1 %v846_v49 }
  0xf5   :  { %v522_v47 = vrot.slane %v2145_v46, %v2134_v42  ;;  %v530_v48 = vrot.slane %v2145_v46, %v2137_v43  ;;  %v518_v50 = vrot.slane %v2145_v46, %v2140_v44 }
  0xf7   :  { %1052 = vmatpush1.bf16.msra.mxu0 %v781_v52  ;;  %1095 = vmatpush1.bf16.msra.mxu1 %v845_v53  ;;  %v526_v52 = vrot.slane %v2145_v46, %v2143_v45  ;;  %v2155_v53 = vld [vmem:[#allocation8] sm:$0xff] }
  0xf8   :  { %1053 = vmatprep.subr.bf16.mxu0 %v842_v54  ;;  %1096 = vmatprep.subr.bf16.mxu1 %v906_v55  ;;  %v580_v57 = vrot.slane %v2155_v53, %v2134_v42  ;;  %v584_v63 = vrot.slane %v2155_v53, %v2143_v45 }
  0xfb   :  { %1054 = vmatpush2.bf16.msra.mxu0 %v841_v58  ;;  %1097 = vmatpush2.bf16.msra.mxu1 %v905_v59  ;;  %v588_v59 = vrot.slane %v2155_v53, %v2137_v43 }
  0xfc   :  { %1055 = vmatprep.subr.bf16.mxu0 %v838_v60  ;;  %1098 = vmatprep.subr.bf16.mxu1 %v902_v61  ;;  %v576_v61 = vrot.slane %v2155_v53, %v2140_v44 }
  0xff   :  { %1056 = vmatpush2.bf16.msra.mxu0 %v837_v24  ;;  %1099 = vmatpush2.bf16.msra.mxu1 %v901_v0 }
 0x100   :  { %1057 = vmatprep.subr.bf16.mxu0 %v834_v1  ;;  %1100 = vmatprep.subr.bf16.mxu1 %v898_v2 }
 0x103   :  { %1058 = vmatpush2.bf16.msra.mxu0 %v833_v5  ;;  %1101 = vmatpush2.bf16.msra.mxu1 %v897_v6 }
 0x104   :  { %1059 = vmatprep.subr.bf16.mxu0 %v830_v7  ;;  %1102 = vmatprep.subr.bf16.mxu1 %v894_v8 }
 0x107   :  { %1060 = vmatpush2.bf16.msra.mxu0 %v829_v11  ;;  %1103 = vmatpush2.bf16.msra.mxu1 %v893_v12 }
 0x108   :  { %1061 = vmatprep.subr.bf16.mxu0 %v826_v13  ;;  %1104 = vmatprep.subr.bf16.mxu1 %v890_v14 }
 0x10b   :  { %1062 = vmatpush2.bf16.msra.mxu0 %v825_v17  ;;  %1105 = vmatpush2.bf16.msra.mxu1 %v889_v18  ;;  %v729_v17 = vld [vmem:[#allocation10 + $0x260] sm:$0xff] }
 0x10c   :  { %1063 = vmatprep.subr.bf16.mxu0 %v822_v19  ;;  %1106 = vmatprep.subr.bf16.mxu1 %v886_v20  ;;  %v761_v18 = vld [vmem:[#allocation10 + $0x360] sm:$0xff]  ;;  %v937_v27 = vunpack.c.h.s8.bf16 %v729_v17 }
 0x10d   :  { %v1001_v28 = vunpack.c.h.s8.bf16 %v761_v18 }
 0x10f   :  { %1064 = vmatpush2.bf16.msra.mxu0 %v821_v23  ;;  %1107 = vmatpush2.bf16.msra.mxu1 %v885_v25 }
 0x110   :  { %1065 = vmatprep.subr.bf16.mxu0 %v818_v26  ;;  %1108 = vmatprep.subr.bf16.mxu1 %v882_v40 }
 0x113   :  { %1066 = vmatpush2.bf16.msra.mxu0 %v817_v29  ;;  %1109 = vmatpush2.bf16.msra.mxu1 %v881_v30 }
 0x114   :  { %1067 = vmatprep.subr.bf16.mxu0 %v814_v31  ;;  %1110 = vmatprep.subr.bf16.mxu1 %v878_v32  ;;  %v934_v31 = vunpack.c.l.s8.bf16 %v2124_v33  ;;  %v998_v32 = vunpack.c.l.s8.bf16 %v2126_v34  ;;  %v757_v34 = vld [vmem:[#allocation10 + $0x340] sm:$0xff] }
 0x117   :  { %1068 = vmatpush2.bf16.msra.mxu0 %v813_v35  ;;  %1111 = vmatpush2.bf16.msra.mxu1 %v877_v36  ;;  %v726_v35 = vld [vmem:[#allocation10 + $0x248] sm:$0xff] }
 0x118   :  { %1123 = vmatprep.subr.bf16.mxu0 %v938_v37  ;;  %1166 = vmatprep.subr.bf16.mxu1 %v1002_v38  ;;  %v758_v36 = vld [vmem:[#allocation10 + $0x348] sm:$0xff]  ;;  %v933_v37 = vunpack.c.l.s8.bf16 %v729_v17  ;;  %v997_v38 = vunpack.c.l.s8.bf16 %v761_v18 }
 0x119   :  { %v994_v33 = vunpack.c.h.s8.bf16 %v758_v36 }
 0x15a   :  { %v375_v49 = vpop.f32.mrf.mxu0  ;;  %v418_v51 = vpop.f32.mrf.mxu1 }
 0x15b   :  { %v555_v60 = vmul.f32 %v518_v50, %v375_v49  ;;  %v557_v62 = vmul.f32 %v526_v52, %v418_v51  ;;  %v926_v51 = vunpack.c.l.s8.bf16 %v726_v35 }
 0x15c   :  { %v377_v54 = vpop.f32.mrf.mxu0  ;;  %v420_v55 = vpop.f32.mrf.mxu1 }
 0x15d   :  { %v556_v56 = vmul.f32 %v522_v47, %v377_v54  ;;  %v558_v58 = vmul.f32 %v530_v48, %v420_v55  ;;  %v613_v9 = vadd.f32 %v576_v61, %v555_v60  ;;  %v615_v10 = vadd.f32 %v584_v63, %v557_v62  ;;  %v722_v54 = vld [vmem:[#allocation10 + $0x228] sm:$0xff]  ;;  %v721_v60 = vld [vmem:[#allocation10 + $0x220] sm:$0xff] }
 0x15e   :  { %v379_v24 = vpop.f32.mrf.mxu0  ;;  %v422_v0 = vpop.f32.mrf.mxu1  ;;  %v754_v55 = vld [vmem:[#allocation10 + $0x328] sm:$0xff]  ;;  %v921_v62 = vunpack.c.h.s8.bf16 %v721_v60 }
 0x15f   :  { %v563_v1 = vmul.f32 %v518_v50, %v379_v24  ;;  %v565_v2 = vmul.f32 %v526_v52, %v422_v0  ;;  %v614_v5 = vadd.f32 %v580_v57, %v556_v56  ;;  %v616_v6 = vadd.f32 %v588_v59, %v558_v58 }
 0x160   :  { %v381_v3 = vpop.f32.mrf.mxu0  ;;  %v424_v4 = vpop.f32.mrf.mxu1  ;;  %v629_v23 = vmax.f32 %v613_v9, 0.0  ;;  %v631_v25 = vmax.f32 %v615_v10, 0.0  ;;  %v993_v50 = vunpack.c.h.s8.bf16 %v757_v34  ;;  %v990_v52 = vunpack.c.l.s8.bf16 %v758_v36 }
 0x161   :  { %v564_v7 = vmul.f32 %v522_v47, %v381_v3  ;;  %v566_v8 = vmul.f32 %v530_v48, %v424_v4  ;;  %v621_v11 = vadd.f32 %v576_v61, %v563_v1  ;;  %v623_v12 = vadd.f32 %v584_v63, %v565_v2  ;;  %v725_v48 = vld [vmem:[#allocation10 + $0x240] sm:$0xff]  ;;  %v718_v1 = vld [vmem:[#allocation10 + $0x208] sm:$0xff] }
 0x162   :  { %v630_v19 = vmax.f32 %v614_v5, 0.0  ;;  %v632_v20 = vmax.f32 %v616_v6, 0.0  ;;  %v930_v47 = vunpack.c.h.s8.bf16 %v726_v35  ;;  %v929_v49 = vunpack.c.h.s8.bf16 %v725_v48  ;;  %v753_v61 = vld [vmem:[#allocation10 + $0x320] sm:$0xff]  ;;  %v750_v2 = vld [vmem:[#allocation10 + $0x308] sm:$0xff] }
 0x163   :  { %v622_v13 = vadd.f32 %v580_v57, %v564_v7  ;;  %v624_v14 = vadd.f32 %v588_v59, %v566_v8  ;;  %v637_v15 = vmax.f32 %v621_v11, 0.0  ;;  %v639_v16 = vmax.f32 %v623_v12, 0.0  ;;  %v717_v7 = vld [vmem:[#allocation10 + $0x200] sm:$0xff] }
 0x164   :  { %v925_v56 = vunpack.c.l.s8.bf16 %v725_v48  ;;  %v989_v57 = vunpack.c.l.s8.bf16 %v757_v34  ;;  %v922_v58 = vunpack.c.h.s8.bf16 %v722_v54  ;;  %v986_v59 = vunpack.c.h.s8.bf16 %v754_v55  ;;  %v749_v8 = vld [vmem:[#allocation10 + $0x300] sm:$0xff] }
 0x165   :  { %v638_v21 = vmax.f32 %v622_v13, 0.0  ;;  %v640_v22 = vmax.f32 %v624_v14, 0.0  ;;  %v2169_v29 = vpack.c.bf16 %v637_v15, %v629_v23  ;;  %v2171_v30 = vpack.c.bf16 %v639_v16, %v631_v25  ;;  %v746_v13 = vld [vmem:[#allocation10 + $0x2e8] sm:$0xff] }
 0x166   :  { %v985_v63 = vunpack.c.h.s8.bf16 %v753_v61  ;;  %v918_v24 = vunpack.c.l.s8.bf16 %v722_v54  ;;  %v982_v0 = vunpack.c.l.s8.bf16 %v754_v55  ;;  %v917_v3 = vunpack.c.l.s8.bf16 %v721_v60  ;;  %v778_v14 = vld [vmem:[#allocation10 + $0x3e8] sm:$0xff] }
 0x167   :  { %v2165_v26 = vpack.c.bf16 %v638_v21, %v630_v19  ;;  %v2167_v40 = vpack.c.bf16 %v640_v22, %v632_v20  ;;  %v981_v4 = vunpack.c.l.s8.bf16 %v753_v61  ;;  %v914_v5 = vunpack.c.h.s8.bf16 %v718_v1  ;;  %v745_v19 = vld [vmem:[#allocation10 + $0x2e0] sm:$0xff] }
 0x168   :  { %v978_v6 = vunpack.c.h.s8.bf16 %v750_v2  ;;  %v913_v9 = vunpack.c.h.s8.bf16 %v717_v7  ;;  %v977_v10 = vunpack.c.h.s8.bf16 %v749_v8  ;;  %v910_v11 = vunpack.c.l.s8.bf16 %v718_v1  ;;  %v777_v20 = vld [vmem:[#allocation10 + $0x3e0] sm:$0xff] }
 0x169   :  { %1069 = vmatprep.mubr.bf16.mxu0 %v2165_v26  ;;  %1112 = vmatprep.mubr.bf16.mxu1 %v2167_v40  ;;  %v974_v12 = vunpack.c.l.s8.bf16 %v750_v2  ;;  %v909_v15 = vunpack.c.l.s8.bf16 %v717_v7  ;;  %v973_v16 = vunpack.c.l.s8.bf16 %v749_v8  ;;  %v970_v17 = vunpack.c.h.s8.bf16 %v746_v13 }
 0x16a   :  { %1070 = vmatmul.mubr.bf16.vlgmr.msra.gmra.mxu0 %v2169_v29  ;;  %1113 = vmatmul.mubr.bf16.vlgmr.msra.gmra.mxu1 %v2171_v30  ;;  %v1034_v18 = vunpack.c.h.s8.bf16 %v778_v14  ;;  %v969_v21 = vunpack.c.h.s8.bf16 %v745_v19  ;;  %v1033_v22 = vunpack.c.h.s8.bf16 %v777_v20  ;;  %v966_v23 = vunpack.c.l.s8.bf16 %v746_v13 }
 0x16b   :  { %1124 = vmatpush1.bf16.msra.mxu0 %v937_v27  ;;  %1167 = vmatpush1.bf16.msra.mxu1 %v1001_v28  ;;  %v1030_v25 = vunpack.c.l.s8.bf16 %v778_v14  ;;  %v742_v27 = vld [vmem:[#allocation10 + $0x2c8] sm:$0xff]  ;;  %v533_v60 = vsub.s32 4, %v2131_v41  ;;  %v541_v61 = vsub.s32 6, %v2131_v41  ;;  %v733_v14 = vld [vmem:[#allocation10 + $0x280] sm:$0xff] }
 0x16c   :  { %1125 = vmatprep.subr.bf16.mxu0 %v934_v31  ;;  %1168 = vmatprep.subr.bf16.mxu1 %v998_v32  ;;  %v774_v28 = vld [vmem:[#allocation10 + $0x3c8] sm:$0xff]  ;;  %v965_v31 = vunpack.c.l.s8.bf16 %v745_v19  ;;  %v1029_v32 = vunpack.c.l.s8.bf16 %v777_v20  ;;  %v962_v35 = vunpack.c.h.s8.bf16 %v742_v27  ;;  %v958_v48 = vunpack.c.l.s8.bf16 %v742_v27 }
 0x16d   :  { %v1026_v36 = vunpack.c.h.s8.bf16 %v774_v28  ;;  %v1022_v34 = vunpack.c.l.s8.bf16 %v774_v28  ;;  %v945_v27 = vunpack.c.h.s8.bf16 %v733_v14 }
 0x16f   :  { %1126 = vmatpush1.bf16.msra.mxu0 %v933_v37  ;;  %1169 = vmatpush1.bf16.msra.mxu1 %v997_v38  ;;  %v741_v37 = vld [vmem:[#allocation10 + $0x2c0] sm:$0xff] }
 0x170   :  { %1127 = vmatprep.subr.bf16.mxu0 %v930_v47  ;;  %1170 = vmatprep.subr.bf16.mxu1 %v994_v33  ;;  %v773_v38 = vld [vmem:[#allocation10 + $0x3c0] sm:$0xff]  ;;  %v961_v47 = vunpack.c.h.s8.bf16 %v741_v37 }
 0x171   :  { %v1025_v33 = vunpack.c.h.s8.bf16 %v773_v38 }
 0x173   :  { %1128 = vmatpush1.bf16.msra.mxu0 %v929_v49  ;;  %1171 = vmatpush1.bf16.msra.mxu1 %v993_v50  ;;  %v738_v49 = vld [vmem:[#allocation10 + $0x2a8] sm:$0xff] }
 0x174   :  { %1129 = vmatprep.subr.bf16.mxu0 %v926_v51  ;;  %1172 = vmatprep.subr.bf16.mxu1 %v990_v52  ;;  %v770_v50 = vld [vmem:[#allocation10 + $0x3a8] sm:$0xff]  ;;  %v957_v51 = vunpack.c.l.s8.bf16 %v741_v37  ;;  %v1021_v52 = vunpack.c.l.s8.bf16 %v773_v38  ;;  %v954_v54 = vunpack.c.h.s8.bf16 %v738_v49 }
 0x175   :  { %v1018_v55 = vunpack.c.h.s8.bf16 %v770_v50 }
 0x177   :  { %1130 = vmatpush1.bf16.msra.mxu0 %v925_v56  ;;  %1173 = vmatpush1.bf16.msra.mxu1 %v989_v57  ;;  %v737_v56 = vld [vmem:[#allocation10 + $0x2a0] sm:$0xff] }
 0x178   :  { %1131 = vmatprep.subr.bf16.mxu0 %v922_v58  ;;  %1174 = vmatprep.subr.bf16.mxu1 %v986_v59  ;;  %v769_v57 = vld [vmem:[#allocation10 + $0x3a0] sm:$0xff]  ;;  %v537_v58 = vsub.s32 5, %v2131_v41  ;;  %v545_v59 = vsub.s32 7, %v2131_v41  ;;  %v542_v41 = vrot.slane %v2145_v46, %v541_v61  ;;  %v949_v8 = vunpack.c.l.s8.bf16 %v737_v56 }
 0x17a   :  { %v538_v1 = vrot.slane %v2145_v46, %v537_v58  ;;  %v546_v2 = vrot.slane %v2145_v46, %v545_v59  ;;  %v604_v19 = vrot.slane %v2155_v53, %v545_v59 }
 0x17b   :  { %1132 = vmatpush1.bf16.msra.mxu0 %v921_v62  ;;  %1175 = vmatpush1.bf16.msra.mxu1 %v985_v63  ;;  %v953_v62 = vunpack.c.h.s8.bf16 %v737_v56  ;;  %v1017_v63 = vunpack.c.h.s8.bf16 %v769_v57 }
 0x17c   :  { %1133 = vmatprep.subr.bf16.mxu0 %v918_v24  ;;  %1176 = vmatprep.subr.bf16.mxu1 %v982_v0  ;;  %v950_v24 = vunpack.c.l.s8.bf16 %v738_v49  ;;  %v1014_v0 = vunpack.c.l.s8.bf16 %v770_v50  ;;  %v668_v49 = vld [vmem:[#allocation10 + $0x78] sm:$0xff] }
 0x17f   :  { %1134 = vmatpush1.bf16.msra.mxu0 %v917_v3  ;;  %1177 = vmatpush1.bf16.msra.mxu1 %v981_v4  ;;  %v734_v3 = vld [vmem:[#allocation10 + $0x288] sm:$0xff] }
 0x180   :  { %1135 = vmatprep.subr.bf16.mxu0 %v914_v5  ;;  %1178 = vmatprep.subr.bf16.mxu1 %v978_v6  ;;  %v766_v4 = vld [vmem:[#allocation10 + $0x388] sm:$0xff]  ;;  %v534_v6 = vrot.slane %v2145_v46, %v533_v60  ;;  %v592_v46 = vrot.slane %v2155_v53, %v533_v60  ;;  %v942_v37 = vunpack.c.l.s8.bf16 %v734_v3 }
 0x181   :  { %v1010_v13 = vunpack.c.h.s8.bf16 %v766_v4  ;;  %v1006_v38 = vunpack.c.l.s8.bf16 %v766_v4 }
 0x183   :  { %1136 = vmatpush1.bf16.msra.mxu0 %v913_v9  ;;  %1179 = vmatpush1.bf16.msra.mxu1 %v977_v10  ;;  %v1013_v9 = vunpack.c.l.s8.bf16 %v769_v57  ;;  %v941_v57 = vunpack.c.l.s8.bf16 %v733_v14  ;;  %v696_v14 = vld [vmem:[#allocation10 + $0x158] sm:$0xff] }
 0x184   :  { %1137 = vmatprep.subr.bf16.mxu0 %v910_v11  ;;  %1180 = vmatprep.subr.bf16.mxu1 %v974_v12  ;;  %v946_v12 = vunpack.c.h.s8.bf16 %v734_v3 }
 0x187   :  { %1138 = vmatpush1.bf16.msra.mxu0 %v909_v15  ;;  %1181 = vmatpush1.bf16.msra.mxu1 %v973_v16  ;;  %v765_v15 = vld [vmem:[#allocation10 + $0x380] sm:$0xff] }
 0x188   :  { %1139 = vmatprep.subr.bf16.mxu0 %v970_v17  ;;  %1182 = vmatprep.subr.bf16.mxu1 %v1034_v18  ;;  %v596_v17 = vrot.slane %v2155_v53, %v537_v58  ;;  %v1009_v28 = vunpack.c.h.s8.bf16 %v765_v15  ;;  %v1005_v58 = vunpack.c.l.s8.bf16 %v765_v15 }
 0x18b   :  { %1140 = vmatpush2.bf16.msra.mxu0 %v969_v21  ;;  %1183 = vmatpush2.bf16.msra.mxu1 %v1033_v22  ;;  %v600_v22 = vrot.slane %v2155_v53, %v541_v61  ;;  %v700_v53 = vld [vmem:[#allocation10 + $0x178] sm:$0xff]  ;;  %v812_v61 = vunpack.c.h.s8.bf16 %v668_v49 }
 0x18c   :  { %1141 = vmatprep.subr.bf16.mxu0 %v966_v23  ;;  %1184 = vmatprep.subr.bf16.mxu1 %v1030_v25 }
 0x18f   :  { %1142 = vmatpush2.bf16.msra.mxu0 %v965_v31  ;;  %1185 = vmatpush2.bf16.msra.mxu1 %v1029_v32 }
 0x190   :  { %1143 = vmatprep.subr.bf16.mxu0 %v962_v35  ;;  %1186 = vmatprep.subr.bf16.mxu1 %v1026_v36 }
 0x193   :  { %1144 = vmatpush2.bf16.msra.mxu0 %v961_v47  ;;  %1187 = vmatpush2.bf16.msra.mxu1 %v1025_v33 }
 0x194   :  { %1145 = vmatprep.subr.bf16.mxu0 %v958_v48  ;;  %1188 = vmatprep.subr.bf16.mxu1 %v1022_v34 }
 0x197   :  { %1146 = vmatpush2.bf16.msra.mxu0 %v957_v51  ;;  %1189 = vmatpush2.bf16.msra.mxu1 %v1021_v52 }
 0x198   :  { %1147 = vmatprep.subr.bf16.mxu0 %v954_v54  ;;  %1190 = vmatprep.subr.bf16.mxu1 %v1018_v55 }
 0x19a   :  { %v461_v5 = vpop.f32.mrf.mxu0  ;;  %v504_v7 = vpop.f32.mrf.mxu1 }
 0x19b   :  { %1148 = vmatpush2.bf16.msra.mxu0 %v953_v62  ;;  %1191 = vmatpush2.bf16.msra.mxu1 %v1017_v63  ;;  %v559_v20 = vmul.f32 %v534_v6, %v461_v5  ;;  %v561_v21 = vmul.f32 %v542_v41, %v504_v7  ;;  %v876_v62 = vunpack.c.h.s8.bf16 %v700_v53  ;;  %v667_v63 = vld [vmem:[#allocation10 + $0x70] sm:$0xff] }
 0x19c   :  { %v463_v10 = vpop.f32.mrf.mxu0  ;;  %v506_v11 = vpop.f32.mrf.mxu1  ;;  %1149 = vmatprep.subr.bf16.mxu0 %v950_v24  ;;  %1192 = vmatprep.subr.bf16.mxu1 %v1014_v0  ;;  %v699_v24 = vld [vmem:[#allocation10 + $0x170] sm:$0xff]  ;;  %v807_v15 = vunpack.c.l.s8.bf16 %v667_v63 }
 0x19d   :  { %v560_v16 = vmul.f32 %v538_v1, %v463_v10  ;;  %v562_v18 = vmul.f32 %v546_v2, %v506_v11  ;;  %v617_v50 = vadd.f32 %v592_v46, %v559_v20  ;;  %v619_v51 = vadd.f32 %v600_v22, %v561_v21  ;;  %v695_v20 = vld [vmem:[#allocation10 + $0x150] sm:$0xff] }
 0x19e   :  { %v465_v23 = vpop.f32.mrf.mxu0  ;;  %v508_v25 = vpop.f32.mrf.mxu1  ;;  %v808_v11 = vunpack.c.l.s8.bf16 %v668_v49  ;;  %v867_v21 = vunpack.c.h.s8.bf16 %v695_v20 }
 0x19f   :  { %1150 = vmatpush2.bf16.msra.mxu0 %v949_v8  ;;  %1193 = vmatpush2.bf16.msra.mxu1 %v1013_v9  ;;  %v567_v31 = vmul.f32 %v534_v6, %v465_v23  ;;  %v569_v32 = vmul.f32 %v542_v41, %v508_v25  ;;  %v618_v47 = vadd.f32 %v596_v17, %v560_v16  ;;  %v633_v4 = vmax.f32 %v617_v50, 0.0  ;;  %v660_v25 = vld [vmem:[#allocation10 + $0x38] sm:$0xff] }
 0x1a0   :  { %v467_v35 = vpop.f32.mrf.mxu0  ;;  %v510_v36 = vpop.f32.mrf.mxu1  ;;  %1151 = vmatprep.subr.bf16.mxu0 %v946_v12  ;;  %1194 = vmatprep.subr.bf16.mxu1 %v1010_v13  ;;  %v620_v33 = vadd.f32 %v604_v19, %v562_v18  ;;  %v635_v5 = vmax.f32 %v619_v51, 0.0  ;;  %v811_v41 = vunpack.c.h.s8.bf16 %v667_v63  ;;  %v875_v8 = vunpack.c.h.s8.bf16 %v699_v24  ;;  %v664_v13 = vld [vmem:[#allocation10 + $0x58] sm:$0xff]  ;;  %v655_v51 = vld [vmem:[#allocation10 + $0x10] sm:$0xff] }
 0x1a1   :  { %v568_v48 = vmul.f32 %v538_v1, %v467_v35  ;;  %v570_v34 = vmul.f32 %v546_v2, %v510_v36  ;;  %v625_v52 = vadd.f32 %v592_v46, %v567_v31  ;;  %v627_v54 = vadd.f32 %v600_v22, %v569_v32  ;;  %v659_v32 = vld [vmem:[#allocation10 + $0x30] sm:$0xff] }
 0x1a2   :  { %v634_v0 = vmax.f32 %v618_v47, 0.0  ;;  %v636_v1 = vmax.f32 %v620_v33, 0.0  ;;  %v872_v12 = vunpack.c.l.s8.bf16 %v700_v53  ;;  %v871_v16 = vunpack.c.l.s8.bf16 %v699_v24  ;;  %v691_v35 = vld [vmem:[#allocation10 + $0x130] sm:$0xff]  ;;  %v656_v33 = vld [vmem:[#allocation10 + $0x18] sm:$0xff] }
 0x1a3   :  { %v626_v55 = vadd.f32 %v596_v17, %v568_v48  ;;  %v628_v56 = vadd.f32 %v604_v19, %v570_v34  ;;  %1152 = vmatpush2.bf16.msra.mxu0 %v945_v27  ;;  %1195 = vmatpush2.bf16.msra.mxu1 %v1009_v28  ;;  %v641_v59 = vmax.f32 %v625_v52, 0.0  ;;  %v643_v60 = vmax.f32 %v627_v54, 0.0  ;;  %v663_v19 = vld [vmem:[#allocation10 + $0x50] sm:$0xff]  ;;  %v692_v27 = vld [vmem:[#allocation10 + $0x138] sm:$0xff] }
 0x1a4   :  { %1153 = vmatprep.subr.bf16.mxu0 %v942_v37  ;;  %1196 = vmatprep.subr.bf16.mxu1 %v1006_v38  ;;  %v804_v17 = vunpack.c.h.s8.bf16 %v664_v13  ;;  %v868_v18 = vunpack.c.h.s8.bf16 %v696_v14  ;;  %v803_v46 = vunpack.c.h.s8.bf16 %v663_v19  ;;  %v800_v22 = vunpack.c.l.s8.bf16 %v664_v13  ;;  %v688_v48 = vld [vmem:[#allocation10 + $0x118] sm:$0xff]  ;;  %v687_v52 = vld [vmem:[#allocation10 + $0x110] sm:$0xff] }
 0x1a5   :  { %v642_v2 = vmax.f32 %v626_v55, 0.0  ;;  %v644_v3 = vmax.f32 %v628_v56, 0.0  ;;  %v2195_v9 = vpack.c.bf16 %v641_v59, %v633_v4  ;;  %v2197_v10 = vpack.c.bf16 %v643_v60, %v635_v5  ;;  %v716_v59 = vld [vmem:[#allocation10 + $0x1f8] sm:$0xff]  ;;  %v683_v24 = vld [vmem:[#allocation10 + $0xf0] sm:$0xff] }
 0x1a6   :  { %v864_v23 = vunpack.c.l.s8.bf16 %v696_v14  ;;  %v796_v28 = vunpack.c.h.s8.bf16 %v660_v25  ;;  %v860_v31 = vunpack.c.h.s8.bf16 %v692_v27  ;;  %v795_v36 = vunpack.c.h.s8.bf16 %v659_v32  ;;  %v680_v5 = vld [vmem:[#allocation10 + $0xd8] sm:$0xff]  ;;  %v679_v14 = vld [vmem:[#allocation10 + $0xd0] sm:$0xff] }
 0x1a7   :  { %1154 = vmatpush2.bf16.msra.mxu0 %v941_v57  ;;  %1197 = vmatpush2.bf16.msra.mxu1 %v1005_v58  ;;  %v2191_v6 = vpack.c.bf16 %v642_v2, %v634_v0  ;;  %v2193_v7 = vpack.c.bf16 %v644_v3, %v636_v1  ;;  %v859_v37 = vunpack.c.h.s8.bf16 %v691_v35  ;;  %v792_v38 = vunpack.c.l.s8.bf16 %v660_v25  ;;  %v684_v58 = vld [vmem:[#allocation10 + $0xf8] sm:$0xff]  ;;  %v715_v0 = vld [vmem:[#allocation10 + $0x1f0] sm:$0xff] }
 0x1a8   :  { %1209 = vmatprep.subr.bf16.mxu0 %v812_v61  ;;  %1252 = vmatprep.subr.bf16.mxu1 %v876_v62  ;;  %v856_v47 = vunpack.c.l.s8.bf16 %v692_v27  ;;  %v791_v34 = vunpack.c.l.s8.bf16 %v659_v32  ;;  %v855_v49 = vunpack.c.l.s8.bf16 %v691_v35  ;;  %v788_v53 = vunpack.c.h.s8.bf16 %v656_v33  ;;  %v675_v27 = vld [vmem:[#allocation10 + $0xb0] sm:$0xff]  ;;  %v672_v35 = vld [vmem:[#allocation10 + $0x98] sm:$0xff] }
 0x1a9   :  { %1155 = vmatprep.mubr.bf16.mxu0 %v2191_v6  ;;  %1198 = vmatprep.mubr.bf16.mxu1 %v2193_v7  ;;  %v852_v50 = vunpack.c.h.s8.bf16 %v688_v48  ;;  %v787_v54 = vunpack.c.h.s8.bf16 %v655_v51  ;;  %v851_v55 = vunpack.c.h.s8.bf16 %v687_v52  ;;  %v784_v56 = vunpack.c.l.s8.bf16 %v656_v33 }
 0x1aa   :  { %1156 = vmatmul.mubr.bf16.vlgmr.msra.gmra.mxu0 %v2195_v9  ;;  %1199 = vmatmul.mubr.bf16.vlgmr.msra.gmra.mxu1 %v2197_v10  ;;  %v848_v57 = vunpack.c.l.s8.bf16 %v688_v48  ;;  %v783_v60 = vunpack.c.l.s8.bf16 %v655_v51  ;;  %v847_v61 = vunpack.c.l.s8.bf16 %v687_v52  ;;  %v844_v62 = vunpack.c.h.s8.bf16 %v684_v58  ;;  %v671_v48 = vld [vmem:[#allocation10 + $0x90] sm:$0xff]  ;;  %v732_v52 = vld [vmem:[#allocation10 + $0x278] sm:$0xff] }
 0x1ab   :  { %1210 = vmatpush1.bf16.msra.mxu0 %v811_v41  ;;  %1253 = vmatpush1.bf16.msra.mxu1 %v875_v8  ;;  %v908_v63 = vunpack.c.h.s8.bf16 %v716_v59  ;;  %v843_v1 = vunpack.c.h.s8.bf16 %v683_v24  ;;  %v907_v2 = vunpack.c.h.s8.bf16 %v715_v0  ;;  %v840_v3 = vunpack.c.l.s8.bf16 %v684_v58  ;;  %v712_v41 = vld [vmem:[#allocation10 + $0x1d8] sm:$0xff] }
 0x1ac   :  { %1241 = vmatprep.mubr.bf16.mxu0 %v2165_v26  ;;  %1284 = vmatprep.mubr.bf16.mxu1 %v2167_v40  ;;  %v799_v26 = vunpack.c.l.s8.bf16 %v663_v19  ;;  %v863_v40 = vunpack.c.l.s8.bf16 %v695_v20  ;;  %v904_v4 = vunpack.c.l.s8.bf16 %v716_v59  ;;  %v839_v8 = vunpack.c.l.s8.bf16 %v683_v24  ;;  %v676_v20 = vld [vmem:[#allocation10 + $0xb8] sm:$0xff]  ;;  %v731_v59 = vld [vmem:[#allocation10 + $0x270] sm:$0xff] }
 0x1ad   :  { %1211 = vmatprep.subr.bf16.mxu0 %v808_v11  ;;  %1254 = vmatprep.subr.bf16.mxu1 %v872_v12  ;;  %v903_v11 = vunpack.c.l.s8.bf16 %v715_v0  ;;  %v836_v12 = vunpack.c.h.s8.bf16 %v680_v5  ;;  %v900_v13 = vunpack.c.h.s8.bf16 %v712_v41  ;;  %v896_v19 = vunpack.c.l.s8.bf16 %v712_v41  ;;  %v728_v0 = vld [vmem:[#allocation10 + $0x258] sm:$0xff] }
 0x1af   :  { %1212 = vmatpush1.bf16.msra.mxu0 %v807_v15  ;;  %1255 = vmatpush1.bf16.msra.mxu1 %v871_v16  ;;  %v711_v15 = vld [vmem:[#allocation10 + $0x1d0] sm:$0xff]  ;;  %v835_v16 = vunpack.c.h.s8.bf16 %v679_v14 }
 0x1b0   :  { %1213 = vmatprep.subr.bf16.mxu0 %v804_v17  ;;  %1256 = vmatprep.subr.bf16.mxu1 %v868_v18  ;;  %v899_v17 = vunpack.c.h.s8.bf16 %v711_v15  ;;  %v832_v18 = vunpack.c.l.s8.bf16 %v680_v5  ;;  %v727_v5 = vld [vmem:[#allocation10 + $0x250] sm:$0xff] }
 0x1b3   :  { %1214 = vmatpush1.bf16.msra.mxu0 %v803_v46  ;;  %1257 = vmatpush1.bf16.msra.mxu1 %v867_v21  ;;  %v708_v46 = vld [vmem:[#allocation10 + $0x1b8] sm:$0xff]  ;;  %v831_v21 = vunpack.c.l.s8.bf16 %v679_v14  ;;  %v927_v14 = vunpack.c.l.s8.bf16 %v727_v5 }
 0x1b4   :  { %1215 = vmatprep.subr.bf16.mxu0 %v800_v22  ;;  %1258 = vmatprep.subr.bf16.mxu1 %v864_v23  ;;  %v895_v22 = vunpack.c.l.s8.bf16 %v711_v15  ;;  %v828_v23 = vunpack.c.h.s8.bf16 %v676_v20  ;;  %v892_v25 = vunpack.c.h.s8.bf16 %v708_v46  ;;  %v888_v32 = vunpack.c.l.s8.bf16 %v708_v46 }
 0x1b7   :  { %1216 = vmatpush1.bf16.msra.mxu0 %v799_v26  ;;  %1259 = vmatpush1.bf16.msra.mxu1 %v863_v40  ;;  %v707_v26 = vld [vmem:[#allocation10 + $0x1b0] sm:$0xff]  ;;  %v827_v40 = vunpack.c.h.s8.bf16 %v675_v27 }
 0x1b8   :  { %1217 = vmatprep.subr.bf16.mxu0 %v796_v28  ;;  %1260 = vmatprep.subr.bf16.mxu1 %v860_v31  ;;  %v891_v28 = vunpack.c.h.s8.bf16 %v707_v26  ;;  %v824_v31 = vunpack.c.l.s8.bf16 %v676_v20 }
 0x1bb   :  { %1218 = vmatpush1.bf16.msra.mxu0 %v795_v36  ;;  %1261 = vmatpush1.bf16.msra.mxu1 %v859_v37  ;;  %v704_v36 = vld [vmem:[#allocation10 + $0x198] sm:$0xff]  ;;  %v823_v37 = vunpack.c.l.s8.bf16 %v675_v27 }
 0x1bc   :  { %1219 = vmatprep.subr.bf16.mxu0 %v792_v38  ;;  %1262 = vmatprep.subr.bf16.mxu1 %v856_v47  ;;  %v887_v38 = vunpack.c.l.s8.bf16 %v707_v26  ;;  %v820_v47 = vunpack.c.h.s8.bf16 %v672_v35  ;;  %v884_v33 = vunpack.c.h.s8.bf16 %v704_v36  ;;  %v880_v51 = vunpack.c.l.s8.bf16 %v704_v36 }
 0x1bf   :  { %1220 = vmatpush1.bf16.msra.mxu0 %v791_v34  ;;  %1263 = vmatpush1.bf16.msra.mxu1 %v855_v49  ;;  %v703_v34 = vld [vmem:[#allocation10 + $0x190] sm:$0xff]  ;;  %v819_v49 = vunpack.c.h.s8.bf16 %v671_v48 }
 0x1c0   :  { %1221 = vmatprep.subr.bf16.mxu0 %v788_v53  ;;  %1264 = vmatprep.subr.bf16.mxu1 %v852_v50  ;;  %v883_v53 = vunpack.c.h.s8.bf16 %v703_v34  ;;  %v816_v50 = vunpack.c.l.s8.bf16 %v672_v35 }
 0x1c3   :  { %1222 = vmatpush1.bf16.msra.mxu0 %v787_v54  ;;  %1265 = vmatpush1.bf16.msra.mxu1 %v851_v55  ;;  %v764_v54 = vld [vmem:[#allocation10 + $0x378] sm:$0xff]  ;;  %v815_v55 = vunpack.c.l.s8.bf16 %v671_v48 }
 0x1c4   :  { %1223 = vmatprep.subr.bf16.mxu0 %v784_v56  ;;  %1266 = vmatprep.subr.bf16.mxu1 %v848_v57  ;;  %v879_v56 = vunpack.c.l.s8.bf16 %v703_v34  ;;  %v940_v57 = vunpack.c.h.s8.bf16 %v732_v52  ;;  %v1004_v58 = vunpack.c.h.s8.bf16 %v764_v54  ;;  %v1000_v24 = vunpack.c.l.s8.bf16 %v764_v54 }
 0x1c7   :  { %1224 = vmatpush1.bf16.msra.mxu0 %v783_v60  ;;  %1267 = vmatpush1.bf16.msra.mxu1 %v847_v61  ;;  %v763_v60 = vld [vmem:[#allocation10 + $0x370] sm:$0xff]  ;;  %v939_v61 = vunpack.c.h.s8.bf16 %v731_v59 }
 0x1c8   :  { %1225 = vmatprep.subr.bf16.mxu0 %v844_v62  ;;  %1268 = vmatprep.subr.bf16.mxu1 %v908_v63  ;;  %v1003_v62 = vunpack.c.h.s8.bf16 %v763_v60  ;;  %v936_v63 = vunpack.c.l.s8.bf16 %v732_v52 }
 0x1cb   :  { %1226 = vmatpush2.bf16.msra.mxu0 %v843_v1  ;;  %1269 = vmatpush2.bf16.msra.mxu1 %v907_v2  ;;  %v760_v1 = vld [vmem:[#allocation10 + $0x358] sm:$0xff]  ;;  %v935_v2 = vunpack.c.l.s8.bf16 %v731_v59 }
 0x1cc   :  { %1227 = vmatprep.subr.bf16.mxu0 %v840_v3  ;;  %1270 = vmatprep.subr.bf16.mxu1 %v904_v4  ;;  %v999_v3 = vunpack.c.l.s8.bf16 %v763_v60  ;;  %v932_v4 = vunpack.c.h.s8.bf16 %v728_v0  ;;  %v996_v41 = vunpack.c.h.s8.bf16 %v760_v1 }
 0x1cf   :  { %1228 = vmatpush2.bf16.msra.mxu0 %v839_v8  ;;  %1271 = vmatpush2.bf16.msra.mxu1 %v903_v11  ;;  %v759_v8 = vld [vmem:[#allocation10 + $0x350] sm:$0xff]  ;;  %v931_v11 = vunpack.c.h.s8.bf16 %v727_v5 }
 0x1d0   :  { %1229 = vmatprep.subr.bf16.mxu0 %v836_v12  ;;  %1272 = vmatprep.subr.bf16.mxu1 %v900_v13  ;;  %v992_v12 = vunpack.c.l.s8.bf16 %v760_v1  ;;  %v756_v13 = vld [vmem:[#allocation10 + $0x338] sm:$0xff] }
 0x1d3   :  { %1230 = vmatpush2.bf16.msra.mxu0 %v835_v16  ;;  %1273 = vmatpush2.bf16.msra.mxu1 %v899_v17  ;;  %v723_v16 = vld [vmem:[#allocation10 + $0x230] sm:$0xff]  ;;  %v988_v17 = vunpack.c.h.s8.bf16 %v756_v13 }
 0x1d4   :  { %1231 = vmatprep.subr.bf16.mxu0 %v832_v18  ;;  %1274 = vmatprep.subr.bf16.mxu1 %v896_v19  ;;  %v755_v18 = vld [vmem:[#allocation10 + $0x330] sm:$0xff]  ;;  %v923_v19 = vunpack.c.h.s8.bf16 %v723_v16 }
 0x1d5   :  { %v987_v20 = vunpack.c.h.s8.bf16 %v755_v18  ;;  %v983_v27 = vunpack.c.l.s8.bf16 %v755_v18 }
 0x1d7   :  { %1232 = vmatpush2.bf16.msra.mxu0 %v831_v21  ;;  %1275 = vmatpush2.bf16.msra.mxu1 %v895_v22  ;;  %v984_v21 = vunpack.c.l.s8.bf16 %v756_v13  ;;  %v720_v22 = vld [vmem:[#allocation10 + $0x218] sm:$0xff] }
 0x1d8   :  { %1233 = vmatprep.subr.bf16.mxu0 %v828_v23  ;;  %1276 = vmatprep.subr.bf16.mxu1 %v892_v25  ;;  %v752_v23 = vld [vmem:[#allocation10 + $0x318] sm:$0xff]  ;;  %v919_v25 = vunpack.c.l.s8.bf16 %v723_v16  ;;  %v916_v26 = vunpack.c.h.s8.bf16 %v720_v22  ;;  %v912_v36 = vunpack.c.l.s8.bf16 %v720_v22 }
 0x1db   :  { %1234 = vmatpush2.bf16.msra.mxu0 %v827_v40  ;;  %1277 = vmatpush2.bf16.msra.mxu1 %v891_v28  ;;  %v719_v40 = vld [vmem:[#allocation10 + $0x210] sm:$0xff]  ;;  %v980_v28 = vunpack.c.h.s8.bf16 %v752_v23 }
 0x1dc   :  { %1235 = vmatprep.subr.bf16.mxu0 %v824_v31  ;;  %1278 = vmatprep.subr.bf16.mxu1 %v888_v32  ;;  %v751_v31 = vld [vmem:[#allocation10 + $0x310] sm:$0xff]  ;;  %v915_v32 = vunpack.c.h.s8.bf16 %v719_v40 }
 0x1dd   :  { %v979_v35 = vunpack.c.h.s8.bf16 %v751_v31  ;;  %v975_v48 = vunpack.c.l.s8.bf16 %v751_v31  ;;  %v1456_v31 = vld [vmem:[#allocation11 + $0x18] sm:$0xff] }
 0x1df   :  { %1236 = vmatpush2.bf16.msra.mxu0 %v823_v37  ;;  %1279 = vmatpush2.bf16.msra.mxu1 %v887_v38  ;;  %v976_v37 = vunpack.c.l.s8.bf16 %v752_v23  ;;  %v748_v38 = vld [vmem:[#allocation10 + $0x2f8] sm:$0xff] }
 0x1e0   :  { %1237 = vmatprep.subr.bf16.mxu0 %v820_v47  ;;  %1280 = vmatprep.subr.bf16.mxu1 %v884_v33  ;;  %v780_v47 = vld [vmem:[#allocation10 + $0x3f8] sm:$0xff]  ;;  %v911_v33 = vunpack.c.l.s8.bf16 %v719_v40  ;;  %v972_v34 = vunpack.c.h.s8.bf16 %v748_v38  ;;  %v968_v54 = vunpack.c.l.s8.bf16 %v748_v38 }
 0x1e3   :  { %1238 = vmatpush2.bf16.msra.mxu0 %v819_v49  ;;  %1281 = vmatpush2.bf16.msra.mxu1 %v883_v53  ;;  %v747_v49 = vld [vmem:[#allocation10 + $0x2f0] sm:$0xff]  ;;  %v1036_v53 = vunpack.c.h.s8.bf16 %v780_v47 }
 0x1e4   :  { %1239 = vmatprep.subr.bf16.mxu0 %v816_v50  ;;  %1282 = vmatprep.subr.bf16.mxu1 %v880_v51  ;;  %v779_v50 = vld [vmem:[#allocation10 + $0x3f0] sm:$0xff]  ;;  %v971_v51 = vunpack.c.h.s8.bf16 %v747_v49 }
 0x1e5   :  { %v1035_v52 = vunpack.c.h.s8.bf16 %v779_v50  ;;  %v1031_v59 = vunpack.c.l.s8.bf16 %v779_v50 }
 0x1e7   :  { %1240 = vmatpush2.bf16.msra.mxu0 %v815_v55  ;;  %1283 = vmatpush2.bf16.msra.mxu1 %v879_v56  ;;  %v1032_v55 = vunpack.c.l.s8.bf16 %v780_v47  ;;  %v744_v56 = vld [vmem:[#allocation10 + $0x2d8] sm:$0xff]  ;;  %v1455_v47 = vld [vmem:[#allocation11 + $0x10] sm:$0xff] }
 0x1e8   :  { %1295 = vmatprep.subr.bf16.mxu0 %v940_v57  ;;  %1338 = vmatprep.subr.bf16.mxu1 %v1004_v58  ;;  %v776_v57 = vld [vmem:[#allocation10 + $0x3d8] sm:$0xff]  ;;  %v967_v58 = vunpack.c.l.s8.bf16 %v747_v49  ;;  %v964_v60 = vunpack.c.h.s8.bf16 %v744_v56  ;;  %v960_v1 = vunpack.c.l.s8.bf16 %v744_v56 }
 0x1e9   :  { %v1468_v49 = vld [vmem:[#allocation11 + $0x78] sm:$0xff] }
 0x1ea   :  { %1242 = vmatmul.mubr.bf16.vlgmr.msra.gmra.mxu0 %v2169_v29  ;;  %1285 = vmatmul.mubr.bf16.vlgmr.msra.gmra.mxu1 %v2171_v30  ;;  %v995_v29 = vunpack.c.h.s8.bf16 %v759_v8  ;;  %v928_v30 = vunpack.c.l.s8.bf16 %v728_v0  ;;  %v1500_v50 = vunpack.c.h.s8.bf16 %v1468_v49 }
 0x1eb   :  { %1296 = vmatpush1.bf16.msra.mxu0 %v939_v61  ;;  %1327 = vmatprep.mubr.bf16.mxu0 %v2191_v6  ;;  %v724_v6 = vld [vmem:[#allocation10 + $0x238] sm:$0xff]  ;;  %v743_v61 = vld [vmem:[#allocation10 + $0x2d0] sm:$0xff] }
 0x1ec   :  { %1339 = vmatpush1.bf16.msra.mxu1 %v1003_v62  ;;  %1370 = vmatprep.mubr.bf16.mxu1 %v2193_v7  ;;  %v991_v7 = vunpack.c.l.s8.bf16 %v759_v8  ;;  %v924_v15 = vunpack.c.h.s8.bf16 %v724_v6  ;;  %v920_v46 = vunpack.c.l.s8.bf16 %v724_v6  ;;  %v1028_v62 = vunpack.c.h.s8.bf16 %v776_v57 }
 0x1ed   :  { %1297 = vmatprep.subr.bf16.mxu0 %v936_v63  ;;  %1340 = vmatprep.subr.bf16.mxu1 %v1000_v24  ;;  %v775_v63 = vld [vmem:[#allocation10 + $0x3d0] sm:$0xff]  ;;  %v963_v24 = vunpack.c.h.s8.bf16 %v743_v61  ;;  %v959_v5 = vunpack.c.l.s8.bf16 %v743_v61  ;;  %v1457_v61 = vld [vmem:[#allocation11 + $0x20] sm:$0xff] }
 0x1ee   :  { %v1027_v0 = vunpack.c.h.s8.bf16 %v775_v63 }
 0x1ef   :  { %1298 = vmatpush1.bf16.msra.mxu0 %v935_v2  ;;  %v1024_v2 = vunpack.c.l.s8.bf16 %v776_v57 }
 0x1f0   :  { %1341 = vmatpush1.bf16.msra.mxu1 %v999_v3  ;;  %1299 = vmatprep.subr.bf16.mxu0 %v932_v4  ;;  %v740_v3 = vld [vmem:[#allocation10 + $0x2b8] sm:$0xff] }
 0x1f1   :  { %1342 = vmatprep.subr.bf16.mxu1 %v996_v41  ;;  %v772_v4 = vld [vmem:[#allocation10 + $0x3b8] sm:$0xff]  ;;  %v1023_v41 = vunpack.c.l.s8.bf16 %v775_v63  ;;  %v956_v8 = vunpack.c.h.s8.bf16 %v740_v3  ;;  %v952_v13 = vunpack.c.l.s8.bf16 %v740_v3 }
 0x1f3   :  { %1300 = vmatpush1.bf16.msra.mxu0 %v931_v11  ;;  %v739_v11 = vld [vmem:[#allocation10 + $0x2b0] sm:$0xff] }
 0x1f4   :  { %1343 = vmatpush1.bf16.msra.mxu1 %v995_v29  ;;  %1301 = vmatprep.subr.bf16.mxu0 %v928_v30  ;;  %v1020_v29 = vunpack.c.h.s8.bf16 %v772_v4  ;;  %v771_v30 = vld [vmem:[#allocation10 + $0x3b0] sm:$0xff]  ;;  %v951_v16 = vunpack.c.l.s8.bf16 %v739_v11 }
 0x1f5   :  { %1344 = vmatprep.subr.bf16.mxu1 %v992_v12  ;;  %v955_v12 = vunpack.c.h.s8.bf16 %v739_v11  ;;  %v1019_v6 = vunpack.c.h.s8.bf16 %v771_v30 }
 0x1f7   :  { %1302 = vmatpush1.bf16.msra.mxu0 %v927_v14  ;;  %v1016_v14 = vunpack.c.l.s8.bf16 %v772_v4 }
 0x1f8   :  { %1345 = vmatpush1.bf16.msra.mxu1 %v991_v7  ;;  %1303 = vmatprep.subr.bf16.mxu0 %v924_v15  ;;  %v736_v7 = vld [vmem:[#allocation10 + $0x298] sm:$0xff] }
 0x1f9   :  { %1346 = vmatprep.subr.bf16.mxu1 %v988_v17  ;;  %v768_v15 = vld [vmem:[#allocation10 + $0x398] sm:$0xff]  ;;  %v1015_v17 = vunpack.c.l.s8.bf16 %v771_v30  ;;  %v948_v18 = vunpack.c.h.s8.bf16 %v736_v7  ;;  %v944_v23 = vunpack.c.l.s8.bf16 %v736_v7 }
 0x1fb   :  { %1304 = vmatpush1.bf16.msra.mxu0 %v923_v19  ;;  %v735_v19 = vld [vmem:[#allocation10 + $0x290] sm:$0xff] }
 0x1fc   :  { %1347 = vmatpush1.bf16.msra.mxu1 %v987_v20  ;;  %1305 = vmatprep.subr.bf16.mxu0 %v920_v46  ;;  %v1012_v20 = vunpack.c.h.s8.bf16 %v768_v15  ;;  %v767_v46 = vld [vmem:[#allocation10 + $0x390] sm:$0xff] }
 0x1fd   :  { %1348 = vmatprep.subr.bf16.mxu1 %v984_v21  ;;  %v947_v21 = vunpack.c.h.s8.bf16 %v735_v19  ;;  %v1011_v22 = vunpack.c.h.s8.bf16 %v767_v46  ;;  %v1007_v40 = vunpack.c.l.s8.bf16 %v767_v46  ;;  %v1466_v46 = vld [vmem:[#allocation11 + $0x68] sm:$0xff] }
 0x1ff   :  { %1306 = vmatpush1.bf16.msra.mxu0 %v919_v25  ;;  %v1008_v25 = vunpack.c.l.s8.bf16 %v768_v15 }
 0x200   :  { %1349 = vmatpush1.bf16.msra.mxu1 %v983_v27  ;;  %1307 = vmatprep.subr.bf16.mxu0 %v916_v26  ;;  %v1460_v27 = vld [vmem:[#allocation11 + $0x38] sm:$0xff]  ;;  %v943_v26 = vunpack.c.l.s8.bf16 %v735_v19 }
 0x201   :  { %1350 = vmatprep.subr.bf16.mxu1 %v980_v28  ;;  %v1484_v28 = vunpack.c.h.s8.bf16 %v1460_v27 }
 0x203   :  { %1308 = vmatpush1.bf16.msra.mxu0 %v915_v32  ;;  %v1476_v32 = vunpack.c.h.s8.bf16 %v1456_v31 }
 0x204   :  { %1351 = vmatpush1.bf16.msra.mxu1 %v979_v35  ;;  %1309 = vmatprep.subr.bf16.mxu0 %v912_v36  ;;  %v1483_v35 = vunpack.c.l.s8.bf16 %v1460_v27  ;;  %v1459_v36 = vld [vmem:[#allocation11 + $0x30] sm:$0xff]  ;;  %v1462_v27 = vld [vmem:[#allocation11 + $0x48] sm:$0xff] }
 0x205   :  { %1352 = vmatprep.subr.bf16.mxu1 %v976_v37  ;;  %v1475_v37 = vunpack.c.l.s8.bf16 %v1456_v31  ;;  %v1482_v38 = vunpack.c.h.s8.bf16 %v1459_v36 }
 0x207   :  { %1310 = vmatpush1.bf16.msra.mxu0 %v911_v33  ;;  %v1474_v33 = vunpack.c.h.s8.bf16 %v1455_v47 }
 0x208   :  { %1353 = vmatpush1.bf16.msra.mxu1 %v975_v48  ;;  %1311 = vmatprep.subr.bf16.mxu0 %v972_v34  ;;  %v1481_v48 = vunpack.c.l.s8.bf16 %v1459_v36  ;;  %v1458_v34 = vld [vmem:[#allocation11 + $0x28] sm:$0xff]  ;;  %v2223_v36 = vld [vmem:[%s2271_s6] sm:$0xf] }
 0x209   :  { %1354 = vmatprep.subr.bf16.mxu1 %v1036_v53  ;;  %v1464_v53 = vld [vmem:[#allocation11 + $0x58] sm:$0xff] }
 0x20a   :  { %v1491_v56 = vunpack.c.l.s8.bf16 %v1464_v53 }
 0x20b   :  { %1312 = vmatpush2.bf16.msra.mxu0 %v971_v51  ;;  %v1492_v51 = vunpack.c.h.s8.bf16 %v1464_v53 }
 0x20c   :  { %1355 = vmatpush2.bf16.msra.mxu1 %v1035_v52  ;;  %1313 = vmatprep.subr.bf16.mxu0 %v968_v54  ;;  %v1499_v52 = vunpack.c.l.s8.bf16 %v1468_v49  ;;  %v1473_v54 = vunpack.c.l.s8.bf16 %v1455_v47 }
 0x20d   :  { %1356 = vmatprep.subr.bf16.mxu1 %v1032_v55  ;;  %v1454_v55 = vld [vmem:[#allocation11 + $0x8] sm:$0xff] }
 0x20e   :  { %v1471_v63 = vunpack.c.l.s8.bf16 %v1454_v55 }
 0x20f   :  { %1314 = vmatpush2.bf16.msra.mxu0 %v967_v58  ;;  %v1463_v58 = vld [vmem:[#allocation11 + $0x50] sm:$0xff] }
 0x210   :  { %1357 = vmatpush2.bf16.msra.mxu1 %v1031_v59  ;;  %1315 = vmatprep.subr.bf16.mxu0 %v964_v60  ;;  %v1472_v59 = vunpack.c.h.s8.bf16 %v1454_v55  ;;  %v1479_v60 = vunpack.c.l.s8.bf16 %v1458_v34  ;;  %v1489_v15 = vunpack.c.l.s8.bf16 %v1463_v58  ;;  %v1465_v55 = vld [vmem:[#allocation11 + $0x60] sm:$0xff] }
 0x211   :  { %1358 = vmatprep.subr.bf16.mxu1 %v1028_v62  ;;  %v1490_v62 = vunpack.c.h.s8.bf16 %v1463_v58 }
 0x213   :  { %1316 = vmatpush2.bf16.msra.mxu0 %v963_v24  ;;  %v1478_v24 = vunpack.c.h.s8.bf16 %v1457_v61 }
 0x214   :  { %1359 = vmatpush2.bf16.msra.mxu1 %v1027_v0  ;;  %1317 = vmatprep.subr.bf16.mxu0 %v960_v1  ;;  %v1453_v0 = vld [vmem:[#allocation11] sm:$0xff] }
 0x215   :  { %1360 = vmatprep.subr.bf16.mxu1 %v1024_v2  ;;  %v1470_v1 = vunpack.c.h.s8.bf16 %v1453_v0  ;;  %v1477_v2 = vunpack.c.l.s8.bf16 %v1457_v61  ;;  %v1469_v3 = vunpack.c.l.s8.bf16 %v1453_v0  ;;  %v1493_v0 = vunpack.c.l.s8.bf16 %v1465_v55 }
 0x217   :  { %1318 = vmatpush2.bf16.msra.mxu0 %v959_v5 }
 0x218   :  { %1361 = vmatpush2.bf16.msra.mxu1 %v1023_v41  ;;  %1319 = vmatprep.subr.bf16.mxu0 %v956_v8 }
 0x219   :  { %1362 = vmatprep.subr.bf16.mxu1 %v1020_v29 }
 0x21b   :  { %1320 = vmatpush2.bf16.msra.mxu0 %v955_v12 }
 0x21c   :  { %1363 = vmatpush2.bf16.msra.mxu1 %v1019_v6  ;;  %1321 = vmatprep.subr.bf16.mxu0 %v952_v13 }
 0x21d   :  { %1364 = vmatprep.subr.bf16.mxu1 %v1016_v14 }
 0x21f   :  { %1322 = vmatpush2.bf16.msra.mxu0 %v951_v16 }
 0x220   :  { %1365 = vmatpush2.bf16.msra.mxu1 %v1015_v17  ;;  %1323 = vmatprep.subr.bf16.mxu0 %v948_v18  ;;  %v2214_v18 = vld [vmem:[%s2270_s5] sm:$0xf] }
 0x221   :  { %1366 = vmatprep.subr.bf16.mxu1 %v1012_v20 }
 0x223   :  { %1324 = vmatpush2.bf16.msra.mxu0 %v947_v21 }
 0x224   :  { %1367 = vmatpush2.bf16.msra.mxu1 %v1011_v22  ;;  %1325 = vmatprep.subr.bf16.mxu0 %v944_v23  ;;  %v1390_v23 = vrot.slane %v2214_v18, %v2134_v42 }
 0x225   :  { %1368 = vmatprep.subr.bf16.mxu1 %v1008_v25  ;;  %v1496_v25 = vunpack.c.h.s8.bf16 %v1466_v46 }
 0x227   :  { %1326 = vmatpush2.bf16.msra.mxu0 %v943_v26 }
 0x228   :  { %1369 = vmatpush2.bf16.msra.mxu1 %v1007_v40  ;;  %1726 = vmatprep.subr.bf16.mxu0 %v1484_v28  ;;  %v1386_v40 = vrot.slane %v2214_v18, %v2140_v44 }
 0x229   :  { %1748 = vmatprep.subr.bf16.mxu1 %v1500_v50  ;;  %v1416_v50 = vrot.slane %v2223_v36, %v2140_v44 }
 0x22a   :  { %1328 = vmatmul.mubr.bf16.vlgmr.msra.gmra.mxu0 %v2195_v9  ;;  %v1467_v9 = vld [vmem:[#allocation11 + $0x70] sm:$0xff]  ;;  %v1071_v4 = vpop.f32.mrf.mxu0  ;;  %v1114_v5 = vpop.f32.mrf.mxu1 }
 0x22b   :  { %1371 = vmatmul.mubr.bf16.vlgmr.msra.gmra.mxu1 %v2197_v10  ;;  %1727 = vmatpush3.bf16.msra.mxu0 %v1476_v32  ;;  %v1480_v10 = vunpack.c.h.s8.bf16 %v1458_v34  ;;  %v1498_v57 = vunpack.c.h.s8.bf16 %v1467_v9  ;;  %v1115_v6 = vadd.f32 %v1114_v5, %v1071_v4  ;;  %v1497_v13 = vunpack.c.l.s8.bf16 %v1467_v9  ;;  %v1607_v5 = vld [vmem:[#allocation13 + $0x18] sm:$0xff] }
 0x22c   :  { %1728 = vmatprep.subr.bf16.mxu0 %v1483_v35  ;;  %1749 = vmatpush3.bf16.msra.mxu1 %v1492_v51  ;;  %v1073_v41 = vpop.f32.mrf.mxu0  ;;  %v1116_v8 = vpop.f32.mrf.mxu1  ;;  %v1488_v32 = vunpack.c.h.s8.bf16 %v1462_v27 }
 0x22d   :  { %1750 = vmatprep.subr.bf16.mxu1 %v1499_v52  ;;  %v1117_v16 = vadd.f32 %v1116_v8, %v1073_v41  ;;  %v1495_v52 = vunpack.c.l.s8.bf16 %v1466_v46  ;;  %v2009_v41 = vmov 0.0   ;;  %v1615_v8 = vunpack.c.h.s8.bf16 %v1607_v5 }
 0x22e   :  { %v1075_v11 = vpop.f32.mrf.mxu0  ;;  %v1118_v29 = vpop.f32.mrf.mxu1 }
 0x22f   :  { %1729 = vmatpush3.bf16.msra.mxu0 %v1475_v37  ;;  %v1119_v21 = vadd.f32 %v1118_v29, %v1075_v11  ;;  %v1614_v11 = vunpack.c.l.s8.bf16 %v1607_v5  ;;  %v1606_v29 = vld [vmem:[#allocation13 + $0x10] sm:$0xff] }
 0x230   :  { %1730 = vmatprep.subr.bf16.mxu0 %v1482_v38  ;;  %1751 = vmatpush3.bf16.msra.mxu1 %v1491_v56  ;;  %v1077_v30 = vpop.f32.mrf.mxu0  ;;  %v1120_v12 = vpop.f32.mrf.mxu1 }
 0x231   :  { %1752 = vmatprep.subr.bf16.mxu1 %v1498_v57  ;;  %v1121_v35 = vadd.f32 %v1120_v12, %v1077_v30  ;;  %v1613_v30 = vunpack.c.h.s8.bf16 %v1606_v29 }
 0x233   :  { %1731 = vmatpush3.bf16.msra.mxu0 %v1474_v33 }
 0x234   :  { %1732 = vmatprep.subr.bf16.mxu0 %v1481_v48  ;;  %1753 = vmatpush3.bf16.msra.mxu1 %v1490_v62  ;;  %v1420_v48 = vrot.slane %v2223_v36, %v2134_v42 }
 0x235   :  { %1754 = vmatprep.subr.bf16.mxu1 %v1497_v13 }
 0x237   :  { %1733 = vmatpush3.bf16.msra.mxu0 %v1473_v54  ;;  %v1487_v54 = vunpack.c.l.s8.bf16 %v1462_v27 }
 0x238   :  { %1734 = vmatprep.subr.bf16.mxu0 %v1480_v10  ;;  %1755 = vmatpush3.bf16.msra.mxu1 %v1489_v15 }
 0x239   :  { %1756 = vmatprep.subr.bf16.mxu1 %v1496_v25 }
 0x23b   :  { %1735 = vmatpush3.bf16.msra.mxu0 %v1472_v59  ;;  %v1494_v59 = vunpack.c.h.s8.bf16 %v1465_v55 }
 0x23c   :  { %1736 = vmatprep.subr.bf16.mxu0 %v1479_v60  ;;  %1757 = vmatpush3.bf16.msra.mxu1 %v1488_v32  ;;  %v1461_v60 = vld [vmem:[#allocation11 + $0x40] sm:$0xff] }
 0x23d   :  { %1758 = vmatprep.subr.bf16.mxu1 %v1495_v52  ;;  %v1486_v61 = vunpack.c.h.s8.bf16 %v1461_v60 }
 0x23f   :  { %1737 = vmatpush3.bf16.msra.mxu0 %v1471_v63 }
 0x240   :  { %1738 = vmatprep.subr.bf16.mxu0 %v1478_v24  ;;  %1759 = vmatpush3.bf16.msra.mxu1 %v1487_v54 }
 0x241   :  { %1760 = vmatprep.subr.bf16.mxu1 %v1494_v59 }
 0x243   :  { %1739 = vmatpush3.bf16.msra.mxu0 %v1470_v1  ;;  %v1485_v1 = vunpack.c.l.s8.bf16 %v1461_v60 }
 0x244   :  { %1740 = vmatprep.subr.bf16.mxu0 %v1477_v2  ;;  %1761 = vmatpush3.bf16.msra.mxu1 %v1486_v61 }
 0x245   :  { %1762 = vmatprep.subr.bf16.mxu1 %v1493_v0 }
 0x247   :  { %1741 = vmatpush3.bf16.msra.mxu0 %v1469_v3 }
 0x248   :  { %1763 = vmatpush3.bf16.msra.mxu1 %v1485_v1  ;;  %1779 = vmatprep.subr.bf16.mxu0 %v2009_v41 }
 0x26a   :  { %v1157_v14 = vpop.f32.mrf.mxu0  ;;  %v1200_v7 = vpop.f32.mrf.mxu1 }
 0x26b   :  { %v1158_v17 = vadd.f32 %v1157_v14, %v1115_v6 }
 0x26c   :  { %v1159_v19 = vpop.f32.mrf.mxu0  ;;  %v1202_v20 = vpop.f32.mrf.mxu1 }
 0x26d   :  { %v1160_v22 = vadd.f32 %v1159_v19, %v1117_v16  ;;  %v1201_v26 = vadd.f32 %v1200_v7, %v1158_v17 }
 0x26e   :  { %v1161_v28 = vpop.f32.mrf.mxu0  ;;  %v1204_v31 = vpop.f32.mrf.mxu1 }
 0x26f   :  { %v1203_v37 = vadd.f32 %v1202_v20, %v1160_v22  ;;  %v1162_v38 = vadd.f32 %v1161_v28, %v1119_v21  ;;  %v1403_v53 = vmul.f32 %v1386_v40, %v1201_v26 }
 0x270   :  { %v1163_v47 = vpop.f32.mrf.mxu0  ;;  %v1206_v51 = vpop.f32.mrf.mxu1 }
 0x271   :  { %v1404_v33 = vmul.f32 %v1390_v23, %v1203_v37  ;;  %v1205_v34 = vadd.f32 %v1204_v31, %v1162_v38  ;;  %v1164_v49 = vadd.f32 %v1163_v47, %v1121_v35  ;;  %v1433_v42 = vadd.f32 %v1416_v50, %v1403_v53 }
 0x272   :  { %v1394_v31 = vrot.slane %v2214_v18, %v2143_v45 }
 0x273   :  { %v1407_v9 = vmul.f32 %v1386_v40, %v1205_v34  ;;  %v1207_v10 = vadd.f32 %v1206_v51, %v1164_v49  ;;  %v1434_v56 = vadd.f32 %v1420_v48, %v1404_v33  ;;  %v1441_v2 = vmax.f32 %v1433_v42, 0.0 }
 0x274   :  { %v1398_v40 = vrot.slane %v2214_v18, %v2137_v43  ;;  %v1428_v34 = vrot.slane %v2223_v36, %v2137_v43  ;;  %v1424_v51 = vrot.slane %v2223_v36, %v2143_v45  ;;  %v1605_v45 = vld [vmem:[#allocation13 + $0x8] sm:$0xff] }
 0x275   :  { %v1437_v57 = vadd.f32 %v1416_v50, %v1407_v9  ;;  %v1408_v58 = vmul.f32 %v1390_v23, %v1207_v10  ;;  %v1442_v24 = vmax.f32 %v1434_v56, 0.0  ;;  %v1611_v36 = vunpack.c.h.s8.bf16 %v1605_v45 }
 0x277   :  { %v1438_v62 = vadd.f32 %v1420_v48, %v1408_v58  ;;  %v1445_v63 = vmax.f32 %v1437_v57, 0.0 }
 0x279   :  { %v1446_v44 = vmax.f32 %v1438_v62, 0.0  ;;  %v1449_v4 = vpack.c.bf16 %v1445_v63, %v1441_v2  ;;  %v1612_v62 = vunpack.c.l.s8.bf16 %v1606_v29  ;;  %v1610_v63 = vunpack.c.l.s8.bf16 %v1605_v45 }
 0x27b   :  { %v1450_v3 = vpack.c.bf16 %v1446_v44, %v1442_v24  ;;  %v1604_v24 = vld [vmem:[#allocation13] sm:$0xff] }
 0x27c   :  { %v1609_v44 = vunpack.c.h.s8.bf16 %v1604_v24  ;;  %v1608_v0 = vunpack.c.l.s8.bf16 %v1604_v24 }
 0x27d   :  { %1533 = vmatprep.mubr.bf16.mxu0 %v1450_v3 }
 0x27e   :  { %1534 = vmatmul.mubr.bf16.vlgmr.msra.gmra.mxu0 %v1449_v4 }
 0x27f   :  { %1780 = vmatpush3.bf16.msra.mxu0 %v1615_v8  ;;  %1795 = vmatprep.mubr.msk.bf16.mxu0 %vm2010_vm0, %v2009_v41 }
 0x280   :  { %1781 = vmatprep.subr.bf16.mxu0 %v2009_v41 }
 0x283   :  { %1782 = vmatpush3.bf16.msra.mxu0 %v1614_v11 }
 0x284   :  { %1783 = vmatprep.subr.bf16.mxu0 %v2009_v41 }
 0x287   :  { %1784 = vmatpush3.bf16.msra.mxu0 %v1613_v30  ;;  %v1722_v30 = vld [vmem:[%s2273_s8] ss:$0 sm:$0xff] }
 0x288   :  { %1785 = vmatprep.subr.bf16.mxu0 %v2009_v41 }
 0x28b   :  { %1786 = vmatpush3.bf16.msra.mxu0 %v1612_v62 }
 0x28c   :  { %1787 = vmatprep.subr.bf16.mxu0 %v2009_v41 }
 0x28f   :  { %1788 = vmatpush3.bf16.msra.mxu0 %v1611_v36 }
 0x290   :  { %1789 = vmatprep.subr.bf16.mxu0 %v2009_v41 }
 0x293   :  { %1790 = vmatpush3.bf16.msra.mxu0 %v1610_v63 }
 0x294   :  { %1791 = vmatprep.subr.bf16.mxu0 %v2009_v41 }
 0x297   :  { %1792 = vmatpush3.bf16.msra.mxu0 %v1609_v44 }
 0x298   :  { %1793 = vmatprep.subr.bf16.mxu0 %v2009_v41  ;;  %v1723_v41 = vld [vmem:[%s2274_s9] ss:$0 sm:$0xff]  ;;  %s2011_s9 = smov [#allocation14]  }
 0x29b   :  { %1794 = vmatpush3.bf16.msra.mxu0 %v1608_v0 }
 0x2aa   :  { %v1243_v12 = vpop.f32.mrf.mxu0  ;;  %v1286_v6 = vpop.f32.mrf.mxu1 }
 0x2ab   :  { %v1287_v17 = vadd.f32 %v1286_v6, %v1243_v12 }
 0x2ac   :  { %v1245_v13 = vpop.f32.mrf.mxu0  ;;  %v1288_v14 = vpop.f32.mrf.mxu1 }
 0x2ad   :  { %v1289_v46 = vadd.f32 %v1288_v14, %v1245_v13 }
 0x2ae   :  { %v1247_v7 = vpop.f32.mrf.mxu0  ;;  %v1290_v15 = vpop.f32.mrf.mxu1 }
 0x2af   :  { %v1291_v25 = vadd.f32 %v1290_v15, %v1247_v7 }
 0x2b0   :  { %v1249_v16 = vpop.f32.mrf.mxu0  ;;  %v1292_v19 = vpop.f32.mrf.mxu1 }
 0x2b1   :  { %v1293_v35 = vadd.f32 %v1292_v19, %v1249_v16 }
 0x2ea   :  { %v1329_v20 = vpop.f32.mrf.mxu0 }
 0x2eb   :  { %v1330_v21 = vadd.f32 %v1329_v20, %v1287_v17  ;;  %v1372_v22 = vpop.f32.mrf.mxu1 }
 0x2ec   :  { %v1331_v23 = vpop.f32.mrf.mxu0 }
 0x2ed   :  { %v1332_v27 = vadd.f32 %v1331_v23, %v1289_v46  ;;  %v1374_v26 = vpop.f32.mrf.mxu1  ;;  %v1373_v28 = vadd.f32 %v1372_v22, %v1330_v21  ;;  %v1724_v23 = vld [vmem:[%s2276_s11] ss:$0 sm:$0xff]  ;;  %s1705_s11 = sshll.u32 %s2011_s9, 4  ;;  %s1706_s11 = int_to_ptr.vmem [resolvable:$true] %s1705_s11 }
 0x2ee   :  { %v1333_v32 = vpop.f32.mrf.mxu0  ;;  %p1971_p8 = scmp.lt.s32.totalorder %s1706_s11, %s1706_s11 }
 0x2ef   :  { %v1375_v37 = vadd.f32 %v1374_v26, %v1332_v27  ;;  %v1334_v38 = vadd.f32 %v1333_v32, %v1291_v25  ;;  %v1376_v47 = vpop.f32.mrf.mxu1  ;;  %v1405_v50 = vmul.f32 %v1394_v31, %v1373_v28  ;;  %v1676_v25 = vand.u32 127, %v515_v39  ;;  %v1725_v26 = vld [vmem:[%s2277_s12] ss:$0 sm:$0xff]  ;;  %s1966_s12 = scalar_lea.vmem %s1706_s11, 256 }
 0x2f0   :  { %v1335_v33 = vpop.f32.mrf.mxu0  ;;  %p1967_p7 = scmp.ne.s32.totalorder %s1706_s11, %s1966_s12  ;;  %p1972_p9 = scmp.lt.s32.totalorder %s1966_s12, %s1966_s12 }
 0x2f1   :  { %v1406_v48 = vmul.f32 %v1398_v40, %v1375_v37  ;;  %v1377_v49 = vadd.f32 %v1376_v47, %v1334_v38  ;;  %v1336_v53 = vadd.f32 %v1335_v33, %v1293_v35  ;;  %v1378_v52 = vpop.f32.mrf.mxu1  ;;  %v1435_v56 = vadd.f32 %v1424_v51, %v1405_v50 }
 0x2f2   :  { %vm1677_vm1 = vcmp.lt.s32.totalorder %v1676_v25, 5  ;;  %p1973_p10 = por %p1972_p9, %p1971_p8 }
 0x2f3   :  { %v1409_v54 = vmul.f32 %v1394_v31, %v1377_v49  ;;  %v1379_v9 = vadd.f32 %v1378_v52, %v1336_v53  ;;  %v1436_v18 = vadd.f32 %v1428_v34, %v1406_v48  ;;  %v1443_v42 = vmax.f32 %v1435_v56, 0.0 }
 0x2f4   :  { %p1974_p11 = pnand %p1973_p10, %p1967_p7 }
 0x2f5   :  { %v1439_v10 = vadd.f32 %v1424_v51, %v1409_v54  ;;  %v1410_v55 = vmul.f32 %v1398_v40, %v1379_v9  ;;  %v1444_v59 = vmax.f32 %v1436_v18, 0.0 }
 0x2f7   :  { %v1440_v57 = vadd.f32 %v1428_v34, %v1410_v55  ;;  %v1447_v58 = vmax.f32 %v1439_v10, 0.0 }
 0x2f9   :  { %v1448_v60 = vmax.f32 %v1440_v57, 0.0  ;;  %v1451_v43 = vpack.c.bf16 %v1447_v58, %v1443_v42 }
 0x2fb   :  { %v1452_v61 = vpack.c.bf16 %v1448_v60, %v1444_v59 }
 0x2fd   :  { %1574 = vmatprep.mubr.bf16.mxu1 %v1452_v61 }
 0x2fe   :  { %1575 = vmatmul.mubr.bf16.vlgmr.msra.gmra.mxu1 %v1451_v43 }
 0x33e   :  { %v1742_v1 = vpop.f32.mrf.mxu0 }
 0x340   :  { %v1743_v2 = vpop.f32.mrf.mxu0 }
 0x341   :  { %v1744_v8 = vadd.f32 %v1743_v2, %v1742_v1 }
 0x342   :  { %v1745_v3 = vpop.f32.mrf.mxu0 }
 0x344   :  { %v1746_v29 = vpop.f32.mrf.mxu0 }
 0x345   :  { %v1747_v14 = vadd.f32 %v1746_v29, %v1745_v3 }
 0x3be   :  { %v1764_v4 = vpop.f32.mrf.mxu1 }
 0x3c0   :  { %v1765_v5 = vpop.f32.mrf.mxu1 }
 0x3c1   :  { %v1766_v11 = vadd.f32 %v1765_v5, %v1764_v4 }
 0x3c2   :  { %v1767_v12 = vpop.f32.mrf.mxu1 }
 0x3c3   :  { %v1577_v6 = vadd.f32 %v1766_v11, %v1744_v8 }
 0x3c4   :  { %v1768_v13 = vpop.f32.mrf.mxu1 }
 0x3c5   :  { %v1590_v7 = vmul.f32 %v1722_v30, %v1577_v6  ;;  %v1769_v15 = vadd.f32 %v1768_v13, %v1767_v12 }
 0x3c7   :  { %v1580_v16 = vadd.f32 %v1769_v15, %v1747_v14  ;;  %v1599_v17 = vadd.f32 %v1723_v41, %v1590_v7 }
 0x3c9   :  { %v1591_v19 = vmul.f32 %v1722_v30, %v1580_v16  ;;  %v1601_v46 = vmax.f32 %v1599_v17, 0.0 }
 0x3cb   :  { %v1600_v20 = vadd.f32 %v1723_v41, %v1591_v19 }
 0x3cd   :  { %v1602_v21 = vmax.f32 %v1600_v20, 0.0 }
 0x3cf   :  { %v1603_v22 = vpack.c.bf16 %v1602_v21, %v1601_v46 }
 0x3d1   :  { %1796 = vmatmul.mubr.bf16.vlgmr.msra.gmra.mxu0 %v1603_v22 }
 0x491   :  { %v1650_v27 = vpop.f32.mrf.mxu0 }
 0x492   :  { %v1664_v40 = vmul.f32 %v1724_v23, %v1650_v27 }
 0x493   :  { %v1797_v28 = vpop.f32.mrf.mxu0 }
 0x494   :  { %v1673_v31 = vadd.f32 %v1725_v26, %v1664_v40 }
 0x495   :  { %v1653_v32 = vpop.f32.mrf.mxu0 }
 0x496   :  { %v1665_v35 = vmul.f32 %v1724_v23, %v1653_v32  ;;  %v1678_v37 = vsel %vm1677_vm1, %v1673_v31, -1e+30 }
 0x497   :  { %1680 = vmax.xlane.f32.xlu0 %v1678_v37  ;;  %v1798_v38 = vpop.f32.mrf.mxu0 }
 0x498   :  { %v1674_v47 = vadd.f32 %v1725_v26, %v1665_v35 }
 0x49a   :  { %v1679_v33 = vsel %vm1677_vm1, %v1674_v47, -1e+30 }
 0x49b   :  { %1682 = vmax.xlane.f32.xlu0 %v1679_v33 }
 0x520   :  { %v1681_v48 = vpop.xlane.xlu0 %1680 }
 0x521   :  { %v1684_v34 = vsub.f32 %v1678_v37, %v1681_v48 }
 0x523   :  { %v1686_v39 = vmul.f32 1.442695, %v1684_v34 }
 0x524   :  { %v1683_v49 = vpop.xlane.xlu0 %1682 }
 0x525   :  { %1818 = vpow2.f32 %v1686_v39  ;;  %v1685_v53 = vsub.f32 %v1679_v33, %v1683_v49 }
 0x527   :  { %v1688_v50 = vmul.f32 1.442695, %v1685_v53 }
 0x529   :  { %1820 = vpow2.f32 %v1688_v50 }
 0x532   :  { %v1819_v51 = vpop.eup %1818 }
 0x533   :  { %1690 = vadd.xlane.f32.xlu1 %v1819_v51 }
 0x536   :  { %v1821_v52 = vpop.eup %1820 }
 0x537   :  { %1692 = vadd.xlane.f32.xlu1 %v1821_v52 }
 0x5bc   :  { %v1691_v54 = vpop.xlane.xlu1 %1690 }
 0x5bd   :  { %1822 = vrcp.f32 %v1691_v54 }
 0x5c0   :  { %v1693_v9 = vpop.xlane.xlu1 %1692 }
 0x5c1   :  { %1824 = vrcp.f32 %v1693_v9 }
 0x5ca   :  { %v1823_v18 = vpop.eup %1822 }
 0x5cb   :  { %v1695_v10 = vmul.f32 %v1823_v18, %v1819_v51 }
 0x5cd   :  { %1698 = vst [vmem:[#allocation14] sm:$0xff] %v1695_v10 }
 0x5ce   :  { %v1825_v55 = vpop.eup %1824 }
 0x5cf   :  { %v1697_v56 = vmul.f32 %v1825_v55, %v1821_v52 }
 0x5d1   :  { %1699 = vst [vmem:[#allocation14 + $0x8] sm:$0xff] %v1697_v56 }
 0x5d2   :  { %1977 = shalt.err (!%p1974_p11)
}
 0x5d3   :  { %1711 = dma.vmem_to_hbm [thread:$0]  %s1706_s11, 256, %s2278_s13, [#allocation4], %s2002_s24, %s2002_s24, %s2003_s25  }
 0x5d4   :  { %1994 = dma.done.wait [#allocation4], 256  }
 0x5d5   :  { %1995 = vsyncadd [#allocation4], 4294967040 }
 0x5d6   :  { %1715 = vsyncpa [#allocation3], 1 }
 0x5d7   :  { %1716 = vsyncpa [#allocation6], 1 }
 0x5d8   :  { %1717 = vsyncpa [#allocation9], 1 }
 0x5d9   :  { %1718 = vsyncpa [#allocation12], 1 }
 0x5da   :  { %1719 = vsyncpa [#allocation4], 1 }

</bundles_post_ra>
